<compile_context>
chip_gen: v6e
topology: v6e:2x2x1
jax: 0.10.0
libtpu: 0.0.40
codegen_flags: <defaults>
</compile_context>

<pallas_src>
import jax
import jax.numpy as jnp
from jax.experimental import pallas as pl
from jax.experimental.pallas import tpu as pltpu

LANE = 128  # pad every feature/class/node dim to a full lane group -> lane-dense vregs


def _round_up(n, m):
    return ((n + m - 1) // m) * m


# ----------------------------- fused Pallas kernel ---------------------------

def _build_fused_kernel(num_layers: int, out_dim: int):
    """Full forward pass; everything resident in VMEM for the single invocation."""

    def kernel(*refs):
        l_ref, p_ref, x_ref = refs[0], refs[1], refs[2]
        wb_refs = refs[3:3 + 2 * num_layers]
        wfc_ref, bfc_ref, o_ref = refs[3 + 2 * num_layers:]

        # L_hat loaded ONCE; L2 computed once and reused by all layers.
        L = l_ref[...]                                          # [Np, Np] lane-dense
        L2 = jnp.dot(L, L, preferred_element_type=jnp.float32)  # [Np, Np]

        x = x_ref[...]                                          # [Np, LANE]
        for li in range(num_layers):
            w_ref = wb_refs[2 * li]        # [3*LANE, LANE] = [W0-W2 ; W1 ; 2*W2] (padded)
            b_ref = wb_refs[2 * li + 1]    # [1, LANE]
            # Independent MXU pushes (no L@(L@x) serial chain).
            t1 = jnp.dot(L, x, preferred_element_type=jnp.float32)
            t2r = jnp.dot(L2, x, preferred_element_type=jnp.float32)
            # One stacked weight matmul instead of three matmuls + two adds.
            t = jnp.concatenate([x, t1, t2r], axis=1)           # [Np, 3*LANE] lane-aligned
            x = jnp.dot(t, w_ref[...], preferred_element_type=jnp.float32) + b_ref[...]

        # global_mean_pool as matmul with pooling matrix P, then Linear.
        pooled = jnp.dot(p_ref[...], x, preferred_element_type=jnp.float32)   # [B, LANE]
        y = jnp.dot(pooled, wfc_ref[...], preferred_element_type=jnp.float32) + bfc_ref[...]

        # log_softmax restricted to the first `out_dim` (valid) lanes.
        lane_idx = jax.lax.broadcasted_iota(jnp.int32, y.shape, 1)
        valid = lane_idx < out_dim
        neg = jnp.float32(-1e30)
        ym = jnp.where(valid, y, neg)
        m = jnp.max(ym, axis=1, keepdims=True)
        z = ym - m
        ez = jnp.where(valid, jnp.exp(z), 0.0)
        lse = jnp.log(jnp.sum(ez, axis=1, keepdims=True))
        o_ref[...] = jnp.where(valid, z - lse, 0.0)             # lane-dense [B, LANE] store

    return kernel


# ------------------------------ wrapper ---------------------------------------

def _pad2(a, rows, cols):
    a = jnp.asarray(a, jnp.float32)
    return jnp.pad(a, ((0, rows - a.shape[0]), (0, cols - a.shape[1])))


def chebconvnet_forward(x, L_hat, P, conv_params, fc_params, out_dim):
    """Single fused pallas_call for the whole ChebConvNet forward pass."""
    N = x.shape[0]
    B = P.shape[0]
    num_layers = len(conv_params)
    Np = _round_up(N, LANE)     # lane-dense node dimension

    inputs = [_pad2(L_hat, Np, Np),            # [Np, Np]
              _pad2(P, B, Np),                 # [B, Np]  (zero cols for padded nodes)
              _pad2(x, Np, LANE)]              # [Np, LANE]
    for (W, b) in conv_params:
        assert W.shape[0] == 3, "kernel specialized for K=3"
        # Fold the Chebyshev recursion (t2 = 2*L2@x - t0) into the weights:
        #   out = t0@(W0-W2) + (L@x)@W1 + (L2@x)@(2*W2) + b
        b0 = _pad2(W[0] - W[2], LANE, LANE)
        b1 = _pad2(W[1], LANE, LANE)
        b2 = _pad2(2.0 * W[2], LANE, LANE)
        inputs.append(jnp.concatenate([b0, b1, b2], axis=0))    # [3*LANE, LANE]
        inputs.append(_pad2(b.reshape(1, -1), 1, LANE))
    Wfc, bfc = fc_params
    inputs.append(_pad2(Wfc, LANE, LANE))
    inputs.append(_pad2(bfc.reshape(1, -1), 1, LANE))

    kernel = _build_fused_kernel(num_layers, out_dim)
    vmem = pl.BlockSpec(memory_space=pltpu.MemorySpace.VMEM)
    out_padded = pl.pallas_call(
        kernel,
        out_shape=jax.ShapeDtypeStruct((B, LANE), jnp.float32),
        in_specs=[vmem] * len(inputs),
        out_specs=vmem,
        compiler_params=pltpu.CompilerParams(vmem_limit_bytes=64 << 20),
    )(*inputs)
    return out_padded[:, :out_dim]


# ------------------------- plain-JAX reference (glue) ------------------------

def reference_forward(x, L_hat, P, conv_params, fc_params):
    h = x
    for (W, b) in conv_params:
        t0 = h
        t1 = L_hat @ t0
        t2 = 2.0 * (L_hat @ t1) - t0
        h = t0 @ W[0] + t1 @ W[1] + t2 @ W[2] + b[None, :]
    Wfc, bfc = fc_params
    y = (P @ h) @ Wfc + bfc[None, :]
    return jax.nn.log_softmax(y, axis=1)


# --------------------------------- main ---------------------------------------

if __name__ == "__main__":
    # Model hyper-params (consistent with the module's __init__).
    out_dim = 5
    input_features = 4
    output_channels = 4
    layers_num = 3
    model_dim = 8
    hidden_sf, out_sf, K = 3, 2, 3
    hidden = hidden_sf * model_dim          # 24
    last_out = out_sf * output_channels     # 8

    # Synthetic graph batch: 2 ring graphs of 16 nodes each (N = 32).
    n_per_graph, n_graphs = 16, 2
    N = n_per_graph * n_graphs
    idx = jnp.arange(n_per_graph)
    A = jnp.zeros((N, N), jnp.float32)
    for g in range(n_graphs):
        off = g * n_per_graph
        src = idx + off
        dst = (idx + 1) % n_per_graph + off
        A = A.at[src, dst].set(1.0)
        A = A.at[dst, src].set(1.0)

    # TODO(synk): edge_index -> dense scaled Laplacian & batch -> pooling matrix are
    # one-time graph preprocessing done in plain JAX (sparse scatter aggregation has
    # no clean dense-Pallas equivalent at this scale); the math is expressed as matmuls.
    deg = A.sum(axis=1)
    dinv = jnp.where(deg > 0, 1.0 / jnp.sqrt(deg), 0.0)
    normA = dinv[:, None] * A * dinv[None, :]
    L = jnp.eye(N, dtype=jnp.float32) - normA
    lambda_max = 2.0
    L_hat = (2.0 / lambda_max) * L - jnp.eye(N, dtype=jnp.float32)

    # global_mean_pool as a matrix P[b, n] = 1/|graph_b| if node n in graph b.
    batch = jnp.repeat(jnp.arange(n_graphs), n_per_graph)
    onehot = (batch[None, :] == jnp.arange(n_graphs)[:, None]).astype(jnp.float32)
    P = onehot / onehot.sum(axis=1, keepdims=True)

    # Deterministic parameter init (glorot-uniform weights, zero biases).
    key = jax.random.PRNGKey(0)

    def glorot(k, shape):
        fan_in, fan_out = shape[-2], shape[-1]
        lim = jnp.sqrt(6.0 / (fan_in + fan_out))
        return jax.random.uniform(k, shape, jnp.float32, -lim, lim)

    layer_dims = ([(input_features, hidden)]
                  + [(hidden, hidden)] * (layers_num - 2)
                  + [(hidden, last_out)])
    keys = jax.random.split(key, layers_num + 2)
    conv_params = []
    for li, (fi, fo) in enumerate(layer_dims):
        W = glorot(keys[li], (K, fi, fo))
        b = jnp.zeros((fo,), jnp.float32)
        conv_params.append((W, b))
    Wfc = glorot(keys[layers_num], (last_out, out_dim))
    bfc = jnp.zeros((out_dim,), jnp.float32)
    fc_params = (Wfc, bfc)

    # Node features.
    x = jax.random.normal(keys[layers_num + 1], (N, input_features), jnp.float32)

    out = chebconvnet_forward(x, L_hat, P, conv_params, fc_params, out_dim)
    out = jax.block_until_ready(out)

    ref = reference_forward(x, L_hat, P, conv_params, fc_params)
    assert out.shape == (n_graphs, out_dim)
    assert jnp.allclose(out, ref, atol=1e-4, rtol=1e-4), "Pallas output mismatch vs reference"
    # rows of log_softmax exponentiate-sum to 1
    assert jnp.allclose(jnp.exp(out).sum(axis=1), 1.0, atol=1e-4)

    print("KERNEL_OK")
</pallas_src>

<mosaic_0001>
module attributes {stable_mosaic.version = 11 : i64} {
  func.func @kernel(%arg0: memref<128x128xf32, #tpu.memory_space<vmem>>, %arg1: memref<2x128xf32, #tpu.memory_space<vmem>>, %arg2: memref<128x128xf32, #tpu.memory_space<vmem>>, %arg3: memref<384x128xf32, #tpu.memory_space<vmem>>, %arg4: memref<1x128xf32, #tpu.memory_space<vmem>>, %arg5: memref<384x128xf32, #tpu.memory_space<vmem>>, %arg6: memref<1x128xf32, #tpu.memory_space<vmem>>, %arg7: memref<384x128xf32, #tpu.memory_space<vmem>>, %arg8: memref<1x128xf32, #tpu.memory_space<vmem>>, %arg9: memref<128x128xf32, #tpu.memory_space<vmem>>, %arg10: memref<1x128xf32, #tpu.memory_space<vmem>>, %arg11: memref<2x128xf32, #tpu.memory_space<vmem>>) attributes {dimension_semantics = [], scalar_prefetch = 0 : i64, scratch_operands = 0 : i64, tpu.core_type = #tpu.core_type<tc>} {
    %c0 = arith.constant 0 : index
    %c0_0 = arith.constant 0 : index
    %0 = vector.load %arg0[%c0, %c0_0] : memref<128x128xf32, #tpu.memory_space<vmem>>, vector<128x128xf32>
    %cst = arith.constant dense<0.000000e+00> : vector<128x128xf32>
    %1 = tpu.matmul %0, %0, %cst {dimension_numbers = #tpu.dot_dimension_numbers<[1], [0], [0], [1], [0, 0, 1, 1], [], []>} : vector<128x128xf32>, vector<128x128xf32>, vector<128x128xf32> -> vector<128x128xf32>
    %c0_1 = arith.constant 0 : index
    %c0_2 = arith.constant 0 : index
    %2 = vector.load %arg2[%c0_1, %c0_2] : memref<128x128xf32, #tpu.memory_space<vmem>>, vector<128x128xf32>
    %cst_3 = arith.constant dense<0.000000e+00> : vector<128x128xf32>
    %3 = tpu.matmul %0, %2, %cst_3 {dimension_numbers = #tpu.dot_dimension_numbers<[1], [0], [0], [1], [0, 0, 1, 1], [], []>} : vector<128x128xf32>, vector<128x128xf32>, vector<128x128xf32> -> vector<128x128xf32>
    %cst_4 = arith.constant dense<0.000000e+00> : vector<128x128xf32>
    %4 = tpu.matmul %1, %2, %cst_4 {dimension_numbers = #tpu.dot_dimension_numbers<[1], [0], [0], [1], [0, 0, 1, 1], [], []>} : vector<128x128xf32>, vector<128x128xf32>, vector<128x128xf32> -> vector<128x128xf32>
    %5 = tpu.concatenate %2, %3, %4 in 1 : vector<128x128xf32>, vector<128x128xf32>, vector<128x128xf32> -> vector<128x384xf32>
    %c0_5 = arith.constant 0 : index
    %c0_6 = arith.constant 0 : index
    %6 = vector.load %arg3[%c0_5, %c0_6] : memref<384x128xf32, #tpu.memory_space<vmem>>, vector<384x128xf32>
    %cst_7 = arith.constant dense<0.000000e+00> : vector<128x128xf32>
    %7 = tpu.matmul %5, %6, %cst_7 {dimension_numbers = #tpu.dot_dimension_numbers<[1], [0], [0], [1], [0, 0, 1, 1], [], []>} : vector<128x384xf32>, vector<384x128xf32>, vector<128x128xf32> -> vector<128x128xf32>
    %c0_8 = arith.constant 0 : index
    %c0_9 = arith.constant 0 : index
    %8 = vector.load %arg4[%c0_8, %c0_9] : memref<1x128xf32, #tpu.memory_space<vmem>>, vector<1x128xf32>
    %9 = vector.broadcast %8 : vector<1x128xf32> to vector<128x128xf32>
    %10 = arith.addf %7, %9 : vector<128x128xf32>
    %cst_10 = arith.constant dense<0.000000e+00> : vector<128x128xf32>
    %11 = tpu.matmul %0, %10, %cst_10 {dimension_numbers = #tpu.dot_dimension_numbers<[1], [0], [0], [1], [0, 0, 1, 1], [], []>} : vector<128x128xf32>, vector<128x128xf32>, vector<128x128xf32> -> vector<128x128xf32>
    %cst_11 = arith.constant dense<0.000000e+00> : vector<128x128xf32>
    %12 = tpu.matmul %1, %10, %cst_11 {dimension_numbers = #tpu.dot_dimension_numbers<[1], [0], [0], [1], [0, 0, 1, 1], [], []>} : vector<128x128xf32>, vector<128x128xf32>, vector<128x128xf32> -> vector<128x128xf32>
    %13 = tpu.concatenate %10, %11, %12 in 1 : vector<128x128xf32>, vector<128x128xf32>, vector<128x128xf32> -> vector<128x384xf32>
    %c0_12 = arith.constant 0 : index
    %c0_13 = arith.constant 0 : index
    %14 = vector.load %arg5[%c0_12, %c0_13] : memref<384x128xf32, #tpu.memory_space<vmem>>, vector<384x128xf32>
    %cst_14 = arith.constant dense<0.000000e+00> : vector<128x128xf32>
    %15 = tpu.matmul %13, %14, %cst_14 {dimension_numbers = #tpu.dot_dimension_numbers<[1], [0], [0], [1], [0, 0, 1, 1], [], []>} : vector<128x384xf32>, vector<384x128xf32>, vector<128x128xf32> -> vector<128x128xf32>
    %c0_15 = arith.constant 0 : index
    %c0_16 = arith.constant 0 : index
    %16 = vector.load %arg6[%c0_15, %c0_16] : memref<1x128xf32, #tpu.memory_space<vmem>>, vector<1x128xf32>
    %17 = vector.broadcast %16 : vector<1x128xf32> to vector<128x128xf32>
    %18 = arith.addf %15, %17 : vector<128x128xf32>
    %cst_17 = arith.constant dense<0.000000e+00> : vector<128x128xf32>
    %19 = tpu.matmul %0, %18, %cst_17 {dimension_numbers = #tpu.dot_dimension_numbers<[1], [0], [0], [1], [0, 0, 1, 1], [], []>} : vector<128x128xf32>, vector<128x128xf32>, vector<128x128xf32> -> vector<128x128xf32>
    %cst_18 = arith.constant dense<0.000000e+00> : vector<128x128xf32>
    %20 = tpu.matmul %1, %18, %cst_18 {dimension_numbers = #tpu.dot_dimension_numbers<[1], [0], [0], [1], [0, 0, 1, 1], [], []>} : vector<128x128xf32>, vector<128x128xf32>, vector<128x128xf32> -> vector<128x128xf32>
    %21 = tpu.concatenate %18, %19, %20 in 1 : vector<128x128xf32>, vector<128x128xf32>, vector<128x128xf32> -> vector<128x384xf32>
    %c0_19 = arith.constant 0 : index
    %c0_20 = arith.constant 0 : index
    %22 = vector.load %arg7[%c0_19, %c0_20] : memref<384x128xf32, #tpu.memory_space<vmem>>, vector<384x128xf32>
    %cst_21 = arith.constant dense<0.000000e+00> : vector<128x128xf32>
    %23 = tpu.matmul %21, %22, %cst_21 {dimension_numbers = #tpu.dot_dimension_numbers<[1], [0], [0], [1], [0, 0, 1, 1], [], []>} : vector<128x384xf32>, vector<384x128xf32>, vector<128x128xf32> -> vector<128x128xf32>
    %c0_22 = arith.constant 0 : index
    %c0_23 = arith.constant 0 : index
    %24 = vector.load %arg8[%c0_22, %c0_23] : memref<1x128xf32, #tpu.memory_space<vmem>>, vector<1x128xf32>
    %25 = vector.broadcast %24 : vector<1x128xf32> to vector<128x128xf32>
    %26 = arith.addf %23, %25 : vector<128x128xf32>
    %c0_24 = arith.constant 0 : index
    %c0_25 = arith.constant 0 : index
    %27 = vector.load %arg1[%c0_24, %c0_25] : memref<2x128xf32, #tpu.memory_space<vmem>>, vector<2x128xf32>
    %cst_26 = arith.constant dense<0.000000e+00> : vector<2x128xf32>
    %28 = tpu.matmul %27, %26, %cst_26 {dimension_numbers = #tpu.dot_dimension_numbers<[1], [0], [0], [1], [0, 0, 1, 1], [], []>} : vector<2x128xf32>, vector<128x128xf32>, vector<2x128xf32> -> vector<2x128xf32>
    %c0_27 = arith.constant 0 : index
    %c0_28 = arith.constant 0 : index
    %29 = vector.load %arg9[%c0_27, %c0_28] : memref<128x128xf32, #tpu.memory_space<vmem>>, vector<128x128xf32>
    %cst_29 = arith.constant dense<0.000000e+00> : vector<2x128xf32>
    %30 = tpu.matmul %28, %29, %cst_29 {dimension_numbers = #tpu.dot_dimension_numbers<[1], [0], [0], [1], [0, 0, 1, 1], [], []>} : vector<2x128xf32>, vector<128x128xf32>, vector<2x128xf32> -> vector<2x128xf32>
    %c0_30 = arith.constant 0 : index
    %c0_31 = arith.constant 0 : index
    %31 = vector.load %arg10[%c0_30, %c0_31] : memref<1x128xf32, #tpu.memory_space<vmem>>, vector<1x128xf32>
    %32 = vector.broadcast %31 : vector<1x128xf32> to vector<2x128xf32>
    %33 = arith.addf %30, %32 : vector<2x128xf32>
    %34 = tpu.iota {dimensions = array<i32: 1>} : vector<2x128xi32>
    %c5_i32 = arith.constant 5 : i32
    %35 = vector.broadcast %c5_i32 : i32 to vector<2x128xi32>
    %36 = arith.cmpi slt, %34, %35 : vector<2x128xi32>
    %cst_32 = arith.constant -1.000000e+30 : f32
    %37 = vector.broadcast %cst_32 : f32 to vector<2x128xf32>
    %38 = arith.select %36, %33, %37 : vector<2x128xi1>, vector<2x128xf32>
    %cst_33 = arith.constant dense<0xFF800000> : vector<2xf32>
    %39 = vector.multi_reduction <maximumf>, %38, %cst_33 [1] : vector<2x128xf32> to vector<2xf32>
    %40 = vector.shape_cast %39 : vector<2xf32> to vector<2x1xf32>
    %41 = vector.broadcast %40 : vector<2x1xf32> to vector<2x128xf32>
    %42 = arith.subf %38, %41 : vector<2x128xf32>
    %43 = math.exp %42 : vector<2x128xf32>
    %cst_34 = arith.constant 0.000000e+00 : f32
    %44 = vector.broadcast %cst_34 : f32 to vector<2x128xf32>
    %45 = arith.select %36, %43, %44 : vector<2x128xi1>, vector<2x128xf32>
    %cst_35 = arith.constant dense<0.000000e+00> : vector<2xf32>
    %46 = vector.multi_reduction <add>, %45, %cst_35 [1] : vector<2x128xf32> to vector<2xf32>
    %47 = vector.shape_cast %46 : vector<2xf32> to vector<2x1xf32>
    %48 = math.log %47 : vector<2x1xf32>
    %49 = vector.broadcast %48 : vector<2x1xf32> to vector<2x128xf32>
    %50 = arith.subf %42, %49 : vector<2x128xf32>
    %cst_36 = arith.constant 0.000000e+00 : f32
    %51 = vector.broadcast %cst_36 : f32 to vector<2x128xf32>
    %52 = arith.select %36, %50, %51 : vector<2x128xi1>, vector<2x128xf32>
    %c0_37 = arith.constant 0 : index
    %c0_38 = arith.constant 0 : index
    %53 = vector.load %arg11[%c0_37, %c0_38] : memref<2x128xf32, #tpu.memory_space<vmem>>, vector<2x128xf32>
    tpu.vector_store %arg11[%c0_37, %c0_38], %52 {strides = array<i32>} : memref<2x128xf32, #tpu.memory_space<vmem>>, vector<2x128xf32>,
    return
  }
}

</mosaic_0001>

<bundles_post_ra>
// kernel: tpu_custom_call.1
= control target key start
LH: loop header
LB: loop body
LE: loop exit
PB: predicated region body
PF: predicated region fallthrough
CT: control target
= control target key end

     0   :  { %16 = vsyncpa [#allocation3], 0  ;;  %s4786_s0 = inlined_call_operand.hbm [shape: f32[128,128], index: 0, kind: input, shape index: {}]   ;;  %s4787_s1 = inlined_call_operand.hbm [shape: f32[2,128], index: 1, kind: input, shape index: {}]   ;;  %s4788_s2 = inlined_call_operand.hbm [shape: f32[128,128], index: 2, kind: input, shape index: {}]   ;;  %s4789_s3 = inlined_call_operand.hbm [shape: f32[384,128], index: 3, kind: input, shape index: {}]   ;;  %s4790_s4 = inlined_call_operand.vmem [shape: f32[1,128], index: 4, kind: input, shape index: {}]   ;;  %s4791_s5 = inlined_call_operand.hbm [shape: f32[384,128], index: 5, kind: input, shape index: {}]   ;;  %s4792_s6 = inlined_call_operand.vmem [shape: f32[1,128], index: 6, kind: input, shape index: {}]   ;;  %s4793_s7 = inlined_call_operand.hbm [shape: f32[384,128], index: 7, kind: input, shape index: {}]   ;;  %s4794_s8 = inlined_call_operand.vmem [shape: f32[1,128], index: 8, kind: input, shape index: {}]   ;;  %s4795_s9 = inlined_call_operand.hbm [shape: f32[128,128], index: 9, kind: input, shape index: {}]   ;;  %s4796_s10 = inlined_call_operand.vmem [shape: f32[1,128], index: 10, kind: input, shape index: {}]   ;;  %s4797_s11 = inlined_call_operand.hbm [shape: f32[2,128], index: 11, kind: output, shape index: {}]  }
   0x1   :  { %17 = vsyncpa [#allocation6], 0 }
   0x2   :  { %18 = vsyncpa [#allocation9], 0 }
   0x3   :  { %19 = vsyncpa [#allocation12], 0 }
   0x4   :  { %20 = vsyncpa [#allocation4], 0  ;;  %s3846_s17 = smov [#allocation5]  }
   0x5   :  { %s39_s18 = sshll.u32 %s3846_s17, 4  ;;  %s40_s18 = int_to_ptr.vmem [resolvable:$true] %s39_s18 }
   0x6   :  { %s3684_s19 = scalar_lea.vmem %s40_s18, 32  ;;  %p3689_p1 = scmp.lt.s32.totalorder %s40_s18, %s40_s18 }
   0x7   :  { %p3685_p0 = scmp.ne.s32.totalorder %s40_s18, %s3684_s19  ;;  %p3690_p2 = scmp.lt.s32.totalorder %s3684_s19, %s3684_s19 }
   0x9   :  { %p3691_p3 = por %p3690_p2, %p3689_p1 }
   0xb   :  { %p3692_p4 = pnand %p3691_p3, %p3685_p0 }
   0xd   :  { %3695 = shalt.err (!%p3692_p4)
}
   0xe   :  { %42 = dma.hbm_to_vmem [thread:$0]  %s4787_s1, 32, %s40_s18, [#allocation6]  }
   0xf   :  { %s3847_s22 = smov [#allocation8]   ;;  %s3848_s24 = smov [#allocation11]  }
  0x10   :  { %s60_s23 = sshll.u32 %s3847_s22, 4  ;;  %s88_s25 = sshll.u32 %s3848_s24, 4  ;;  %s61_s23 = int_to_ptr.vmem [resolvable:$true] %s60_s23  ;;  %s89_s25 = int_to_ptr.vmem [resolvable:$true] %s88_s25 }
  0x11   :  { %s3704_s26 = scalar_lea.vmem %s61_s23, 6144  ;;  %p3709_p6 = scmp.lt.s32.totalorder %s61_s23, %s61_s23 }
  0x12   :  { %p3705_p5 = scmp.ne.s32.totalorder %s61_s23, %s3704_s26  ;;  %p3710_p7 = scmp.lt.s32.totalorder %s3704_s26, %s3704_s26 }
  0x14   :  { %p3711_p8 = por %p3710_p7, %p3709_p6 }
  0x16   :  { %p3712_p9 = pnand %p3711_p8, %p3705_p5 }
  0x18   :  { %3715 = shalt.err (!%p3712_p9)
}
  0x19   :  { %s3849_s27 = smov 128   ;;  %s3850_s28 = smov 8  }
  0x1a   :  { %66 = dma.hbm_to_vmem [thread:$0]  %s4789_s3, 6144, %s61_s23, [#allocation9], %s3849_s27, %s3849_s27, %s3850_s28  }
  0x1b   :  { %s3724_s1 = scalar_lea.vmem %s89_s25, 6144  ;;  %p3729_p11 = scmp.lt.s32.totalorder %s89_s25, %s89_s25 }
  0x1c   :  { %p3725_p10 = scmp.ne.s32.totalorder %s89_s25, %s3724_s1  ;;  %p3730_p12 = scmp.lt.s32.totalorder %s3724_s1, %s3724_s1 }
  0x1e   :  { %p3731_p13 = por %p3730_p12, %p3729_p11 }
  0x20   :  { %p3732_p0 = pnand %p3731_p13, %p3725_p10 }
  0x22   :  { %3735 = shalt.err (!%p3732_p0)
}
  0x23   :  { %94 = dma.hbm_to_vmem [thread:$0]  %s4793_s7, 6144, %s89_s25, [#allocation12], %s3849_s27, %s3849_s27, %s3850_s28  }
  0x24   :  { %s3851_s14 = smov [#allocation2]   ;;  %s3852_s16 = smov [#allocation7]  }
  0x25   :  { %s26_s15 = sshll.u32 %s3851_s14, 4  ;;  %s48_s3 = sshll.u32 %s3852_s16, 4  ;;  %s27_s15 = int_to_ptr.vmem [resolvable:$true] %s26_s15  ;;  %s49_s3 = int_to_ptr.vmem [resolvable:$true] %s48_s3 }
  0x26   :  { %s3744_s17 = scalar_lea.vmem %s27_s15, 2048  ;;  %p3749_p2 = scmp.lt.s32.totalorder %s27_s15, %s27_s15 }
  0x27   :  { %p3745_p1 = scmp.ne.s32.totalorder %s27_s15, %s3744_s17  ;;  %p3750_p3 = scmp.lt.s32.totalorder %s3744_s17, %s3744_s17 }
  0x29   :  { %p3751_p4 = por %p3750_p3, %p3749_p2 }
  0x2b   :  { %p3752_p5 = pnand %p3751_p4, %p3745_p1 }
  0x2d   :  { %3755 = shalt.err (!%p3752_p5)
}
  0x2e   :  { %32 = dma.hbm_to_vmem [thread:$0]  %s4786_s0, 2048, %s27_s15, [#allocation3], %s3849_s27, %s3849_s27, %s3850_s28  }
  0x2f   :  { %s3764_s7 = scalar_lea.vmem %s49_s3, 2048  ;;  %p3769_p7 = scmp.lt.s32.totalorder %s49_s3, %s49_s3 }
  0x30   :  { %p3765_p6 = scmp.ne.s32.totalorder %s49_s3, %s3764_s7  ;;  %p3770_p8 = scmp.lt.s32.totalorder %s3764_s7, %s3764_s7 }
  0x32   :  { %p3771_p9 = por %p3770_p8, %p3769_p7 }
  0x34   :  { %p3772_p10 = pnand %p3771_p9, %p3765_p6 }
  0x36   :  { %3775 = shalt.err (!%p3772_p10)
}
  0x37   :  { %54 = dma.hbm_to_vmem [thread:$0]  %s4788_s2, 2048, %s49_s3, [#allocation6], %s3849_s27, %s3849_s27, %s3850_s28  }
  0x38   :  { %s3853_s22 = smov [#allocation10]   ;;  %s3854_s24 = smov [#allocation13]  }
  0x39   :  { %s74_s23 = sshll.u32 %s3853_s22, 4  ;;  %s102_s0 = sshll.u32 %s3854_s24, 4  ;;  %s75_s23 = int_to_ptr.vmem [resolvable:$true] %s74_s23  ;;  %s103_s0 = int_to_ptr.vmem [resolvable:$true] %s102_s0 }
  0x3a   :  { %s3784_s25 = scalar_lea.vmem %s75_s23, 6144  ;;  %p3789_p12 = scmp.lt.s32.totalorder %s75_s23, %s75_s23 }
  0x3b   :  { %p3785_p11 = scmp.ne.s32.totalorder %s75_s23, %s3784_s25  ;;  %p3790_p13 = scmp.lt.s32.totalorder %s3784_s25, %s3784_s25 }
  0x3d   :  { %p3791_p0 = por %p3790_p13, %p3789_p12 }
  0x3f   :  { %p3792_p1 = pnand %p3791_p0, %p3785_p11 }
  0x41   :  { %3795 = shalt.err (!%p3792_p1)
}
  0x42   :  { %80 = dma.hbm_to_vmem [thread:$0]  %s4791_s5, 6144, %s75_s23, [#allocation9], %s3849_s27, %s3849_s27, %s3850_s28  }
  0x43   :  { %s3804_s2 = scalar_lea.vmem %s103_s0, 2048  ;;  %p3809_p3 = scmp.lt.s32.totalorder %s103_s0, %s103_s0 }
  0x44   :  { %p3805_p2 = scmp.ne.s32.totalorder %s103_s0, %s3804_s2  ;;  %p3810_p4 = scmp.lt.s32.totalorder %s3804_s2, %s3804_s2 }
  0x46   :  { %p3811_p5 = por %p3810_p4, %p3809_p3 }
  0x48   :  { %p3812_p6 = pnand %p3811_p5, %p3805_p2 }
  0x4a   :  { %3815 = shalt.err (!%p3812_p6)
}
  0x4b   :  { %108 = dma.hbm_to_vmem [thread:$0]  %s4795_s9, 2048, %s103_s0, [#allocation12], %s3849_s27, %s3849_s27, %s3850_s28  }
  0x4c   :  { %3836 = dma.done.wait [#allocation3], 2048  }
  0x4d   :  { %3837 = vsyncadd [#allocation3], 4294965248 }
  0x4e   :  { %3838 = dma.done.wait [#allocation6], 2080  }
  0x4f   :  { %3839 = vsyncadd [#allocation6], 4294965216 }
  0x50   :  { %3840 = dma.done.wait [#allocation9], 12288  }
  0x51   :  { %3841 = vsyncadd [#allocation9], 4294955008 }
  0x52   :  { %3842 = dma.done.wait [#allocation12], 8192  }
  0x53   :  { %3843 = vsyncadd [#allocation12], 4294959104  ;;  %v3957_v0 = vld [vmem:[#allocation2 + $0x78] sm:$0xff]  ;;  %v3961_v2 = vld [vmem:[#allocation2 + $0x70] sm:$0xff]  ;;  %vm3856_vm0 = vmmov 0   ;;  %vm2382_vm2 = vcmask 1041408  }
  0x54   :  { %v3959_v1 = vld [vmem:[#allocation7 + $0x78] sm:$0xff]  ;;  %3014 = vmatprep.subr.mxu0 %v3957_v0  ;;  %v3965_v3 = vld [vmem:[#allocation7 + $0x70] sm:$0xff]  ;;  %v3969_v4 = vld [vmem:[#allocation2 + $0x68] sm:$0xff] }
  0x55   :  { %3070 = vmatprep.subr.mxu1 %v3959_v1  ;;  %3015 = vmatpush3.msra.mxu0 %v3957_v0  ;;  %v3971_v5 = vld [vmem:[#allocation7 + $0x68] sm:$0xff]  ;;  %v3977_v6 = vld [vmem:[#allocation2 + $0x60] sm:$0xff]  ;;  %v3985_v8 = vld [vmem:[#allocation2 + $0x58] sm:$0xff] }
  0x56   :  { %3071 = vmatpush3.msra.mxu1 %v3959_v1  ;;  %3016 = vmatprep.subr.mxu0 %v3961_v2  ;;  %v3979_v7 = vld [vmem:[#allocation7 + $0x60] sm:$0xff]  ;;  %v3987_v9 = vld [vmem:[#allocation7 + $0x58] sm:$0xff]  ;;  %v3993_v10 = vld [vmem:[#allocation2 + $0x50] sm:$0xff] }
  0x57   :  { %3072 = vmatprep.subr.mxu1 %v3965_v3  ;;  %3017 = vmatpush3.msra.mxu0 %v3961_v2  ;;  %v3995_v11 = vld [vmem:[#allocation7 + $0x50] sm:$0xff]  ;;  %v4001_v12 = vld [vmem:[#allocation2 + $0x48] sm:$0xff]  ;;  %v4009_v14 = vld [vmem:[#allocation2 + $0x40] sm:$0xff] }
  0x58   :  { %3073 = vmatpush3.msra.mxu1 %v3965_v3  ;;  %3018 = vmatprep.subr.mxu0 %v3969_v4  ;;  %v4003_v13 = vld [vmem:[#allocation7 + $0x48] sm:$0xff]  ;;  %v4011_v15 = vld [vmem:[#allocation7 + $0x40] sm:$0xff]  ;;  %v4017_v16 = vld [vmem:[#allocation2 + $0x38] sm:$0xff] }
  0x59   :  { %3074 = vmatprep.subr.mxu1 %v3971_v5  ;;  %3019 = vmatpush3.msra.mxu0 %v3969_v4  ;;  %v4019_v17 = vld [vmem:[#allocation7 + $0x38] sm:$0xff]  ;;  %v4025_v18 = vld [vmem:[#allocation2 + $0x30] sm:$0xff]  ;;  %v4033_v20 = vld [vmem:[#allocation2 + $0x28] sm:$0xff] }
  0x5a   :  { %3075 = vmatpush3.msra.mxu1 %v3971_v5  ;;  %3020 = vmatprep.subr.mxu0 %v3977_v6  ;;  %v4027_v19 = vld [vmem:[#allocation7 + $0x30] sm:$0xff]  ;;  %v4035_v21 = vld [vmem:[#allocation7 + $0x28] sm:$0xff]  ;;  %v4041_v22 = vld [vmem:[#allocation2 + $0x20] sm:$0xff] }
  0x5b   :  { %3076 = vmatprep.subr.mxu1 %v3979_v7  ;;  %3021 = vmatpush3.msra.mxu0 %v3977_v6  ;;  %v4043_v23 = vld [vmem:[#allocation7 + $0x20] sm:$0xff]  ;;  %v4049_v24 = vld [vmem:[#allocation2 + $0x18] sm:$0xff]  ;;  %v4057_v26 = vld [vmem:[#allocation2 + $0x10] sm:$0xff] }
  0x5c   :  { %3077 = vmatpush3.msra.mxu1 %v3979_v7  ;;  %3022 = vmatprep.subr.mxu0 %v3985_v8  ;;  %v4051_v25 = vld [vmem:[#allocation7 + $0x18] sm:$0xff]  ;;  %v4059_v27 = vld [vmem:[#allocation7 + $0x10] sm:$0xff]  ;;  %v4065_v28 = vld [vmem:[#allocation2 + $0x8] sm:$0xff] }
  0x5d   :  { %3078 = vmatprep.subr.mxu1 %v3987_v9  ;;  %3023 = vmatpush3.msra.mxu0 %v3985_v8  ;;  %v4067_v29 = vld [vmem:[#allocation7 + $0x8] sm:$0xff]  ;;  %v4073_v30 = vld [vmem:[#allocation2] sm:$0xff]  ;;  %v629_v34 = vld [vmem:[#allocation8 + $0xf0] sm:$0xff] }
  0x5e   :  { %3079 = vmatpush3.msra.mxu1 %v3987_v9  ;;  %3024 = vmatprep.subr.mxu0 %v3993_v10  ;;  %v4075_v31 = vld [vmem:[#allocation7] sm:$0xff]  ;;  %v630_v32 = vld [vmem:[#allocation8 + $0xf8] sm:$0xff]  ;;  %v613_v35 = vld [vmem:[#allocation8 + $0x70] sm:$0xff] }
  0x5f   :  { %3080 = vmatprep.subr.mxu1 %v3995_v11  ;;  %3025 = vmatpush3.msra.mxu0 %v3993_v10  ;;  %v614_v33 = vld [vmem:[#allocation8 + $0x78] sm:$0xff]  ;;  %v628_v36 = vld [vmem:[#allocation8 + $0xe8] sm:$0xff]  ;;  %v627_v38 = vld [vmem:[#allocation8 + $0xe0] sm:$0xff] }
  0x60   :  { %3081 = vmatpush3.msra.mxu1 %v3995_v11  ;;  %3026 = vmatprep.subr.mxu0 %v4001_v12  ;;  %v612_v37 = vld [vmem:[#allocation8 + $0x68] sm:$0xff]  ;;  %v611_v39 = vld [vmem:[#allocation8 + $0x60] sm:$0xff]  ;;  %v626_v40 = vld [vmem:[#allocation8 + $0xd8] sm:$0xff] }
  0x61   :  { %3082 = vmatprep.subr.mxu1 %v4003_v13  ;;  %3027 = vmatpush3.msra.mxu0 %v4001_v12  ;;  %v610_v41 = vld [vmem:[#allocation8 + $0x58] sm:$0xff]  ;;  %v625_v42 = vld [vmem:[#allocation8 + $0xd0] sm:$0xff]  ;;  %v624_v44 = vld [vmem:[#allocation8 + $0xc8] sm:$0xff] }
  0x62   :  { %3083 = vmatpush3.msra.mxu1 %v4003_v13  ;;  %3028 = vmatprep.subr.mxu0 %v4009_v14  ;;  %v609_v43 = vld [vmem:[#allocation8 + $0x50] sm:$0xff]  ;;  %v608_v45 = vld [vmem:[#allocation8 + $0x48] sm:$0xff]  ;;  %v623_v46 = vld [vmem:[#allocation8 + $0xc0] sm:$0xff] }
  0x63   :  { %3084 = vmatprep.subr.mxu1 %v4011_v15  ;;  %3029 = vmatpush3.msra.mxu0 %v4009_v14  ;;  %v607_v47 = vld [vmem:[#allocation8 + $0x40] sm:$0xff]  ;;  %v622_v48 = vld [vmem:[#allocation8 + $0xb8] sm:$0xff]  ;;  %v621_v50 = vld [vmem:[#allocation8 + $0xb0] sm:$0xff] }
  0x64   :  { %3085 = vmatpush3.msra.mxu1 %v4011_v15  ;;  %3030 = vmatprep.subr.mxu0 %v4017_v16  ;;  %v606_v49 = vld [vmem:[#allocation8 + $0x38] sm:$0xff]  ;;  %v605_v51 = vld [vmem:[#allocation8 + $0x30] sm:$0xff]  ;;  %v620_v52 = vld [vmem:[#allocation8 + $0xa8] sm:$0xff] }
  0x65   :  { %3086 = vmatprep.subr.mxu1 %v4019_v17  ;;  %3031 = vmatpush3.msra.mxu0 %v4017_v16  ;;  %v604_v53 = vld [vmem:[#allocation8 + $0x28] sm:$0xff]  ;;  %v619_v54 = vld [vmem:[#allocation8 + $0xa0] sm:$0xff]  ;;  %v618_v56 = vld [vmem:[#allocation8 + $0x98] sm:$0xff] }
  0x66   :  { %3087 = vmatpush3.msra.mxu1 %v4019_v17  ;;  %3032 = vmatprep.subr.mxu0 %v4025_v18  ;;  %v603_v55 = vld [vmem:[#allocation8 + $0x20] sm:$0xff]  ;;  %v602_v57 = vld [vmem:[#allocation8 + $0x18] sm:$0xff]  ;;  %v617_v58 = vld [vmem:[#allocation8 + $0x90] sm:$0xff] }
  0x67   :  { %3088 = vmatprep.subr.mxu1 %v4027_v19  ;;  %3033 = vmatpush3.msra.mxu0 %v4025_v18  ;;  %v601_v59 = vld [vmem:[#allocation8 + $0x10] sm:$0xff]  ;;  %v616_v60 = vld [vmem:[#allocation8 + $0x88] sm:$0xff]  ;;  %v615_v62 = vld [vmem:[#allocation8 + $0x80] sm:$0xff] }
  0x68   :  { %3089 = vmatpush3.msra.mxu1 %v4027_v19  ;;  %3034 = vmatprep.subr.mxu0 %v4033_v20  ;;  %v600_v61 = vld [vmem:[#allocation8 + $0x8] sm:$0xff]  ;;  %v599_v63 = vld [vmem:[#allocation8] sm:$0xff] }
  0x69   :  { %3090 = vmatprep.subr.mxu1 %v4035_v21  ;;  %3035 = vmatpush3.msra.mxu0 %v4033_v20 }
  0x6a   :  { %3091 = vmatpush3.msra.mxu1 %v4035_v21  ;;  %3036 = vmatprep.subr.mxu0 %v4041_v22 }
  0x6b   :  { %3092 = vmatprep.subr.mxu1 %v4043_v23  ;;  %3037 = vmatpush3.msra.mxu0 %v4041_v22 }
  0x6c   :  { %3093 = vmatpush3.msra.mxu1 %v4043_v23  ;;  %3038 = vmatprep.subr.mxu0 %v4049_v24 }
  0x6d   :  { %3094 = vmatprep.subr.mxu1 %v4051_v25  ;;  %3039 = vmatpush3.msra.mxu0 %v4049_v24 }
  0x6e   :  { %3095 = vmatpush3.msra.mxu1 %v4051_v25  ;;  %3040 = vmatprep.subr.mxu0 %v4057_v26 }
  0x6f   :  { %3096 = vmatprep.subr.mxu1 %v4059_v27  ;;  %3041 = vmatpush3.msra.mxu0 %v4057_v26 }
  0x70   :  { %3097 = vmatpush3.msra.mxu1 %v4059_v27  ;;  %3042 = vmatprep.subr.mxu0 %v4065_v28 }
  0x71   :  { %3098 = vmatprep.subr.mxu1 %v4067_v29  ;;  %3043 = vmatpush3.msra.mxu0 %v4065_v28 }
  0x72   :  { %3099 = vmatpush3.msra.mxu1 %v4067_v29  ;;  %3044 = vmatprep.subr.mxu0 %v4073_v30 }
  0x73   :  { %3100 = vmatprep.subr.mxu1 %v4075_v31  ;;  %3045 = vmatpush3.msra.mxu0 %v4073_v30 }
  0x74   :  { %3046 = vmatprep.mubr.f32.mxu0 %v4073_v30  ;;  %3101 = vmatpush3.msra.mxu1 %v4075_v31 }
  0x75   :  { %3102 = vmatprep.mubr.f32.mxu1 %v4073_v30  ;;  %3047 = vmatmul.mubr.f32.vlgmr.msra.gmra.mxu0 %v4065_v28 }
  0x76   :  { %3103 = vmatmul.mubr.f32.vlgmr.msra.gmra.mxu1 %v4065_v28  ;;  %3049 = vmatprep.mubr.f32.mxu0 %v4057_v26 }
  0x77   :  { %3105 = vmatprep.mubr.f32.mxu1 %v4057_v26  ;;  %3126 = vmatprep.subr.mxu0 %v3959_v1 }
  0x78   :  { %2516 = vmatprep.subr.mxu1 %v630_v32  ;;  %3127 = vmatpush3.msra.mxu0 %v3959_v1 }
  0x79   :  { %2517 = vmatpush3.msra.mxu1 %v614_v33  ;;  %3050 = vmatmul.mubr.f32.gmra.mxu0 %v4049_v24  ;;  %v643_v33 = vld [vmem:[#allocation8 + $0x160] sm:$0xff] }
  0x7a   :  { %3106 = vmatmul.mubr.f32.gmra.mxu1 %v4049_v24  ;;  %3052 = vmatprep.mubr.f32.mxu0 %v4041_v22 }
  0x7b   :  { %3108 = vmatprep.mubr.f32.mxu1 %v4041_v22  ;;  %3128 = vmatprep.subr.mxu0 %v3965_v3 }
  0x7c   :  { %2518 = vmatprep.subr.mxu1 %v629_v34  ;;  %3129 = vmatpush3.msra.mxu0 %v3965_v3 }
  0x7d   :  { %2519 = vmatpush3.msra.mxu1 %v613_v35  ;;  %3053 = vmatmul.mubr.f32.gmra.mxu0 %v4033_v20  ;;  %v642_v35 = vld [vmem:[#allocation8 + $0x158] sm:$0xff] }
  0x7e   :  { %3109 = vmatmul.mubr.f32.gmra.mxu1 %v4033_v20  ;;  %3055 = vmatprep.mubr.f32.mxu0 %v4025_v18  ;;  %v644_v20 = vld [vmem:[#allocation8 + $0x168] sm:$0xff] }
  0x7f   :  { %3111 = vmatprep.mubr.f32.mxu1 %v4025_v18  ;;  %3130 = vmatprep.subr.mxu0 %v3971_v5 }
  0x80   :  { %2520 = vmatprep.subr.mxu1 %v628_v36  ;;  %3131 = vmatpush3.msra.mxu0 %v3971_v5 }
  0x81   :  { %2521 = vmatpush3.msra.mxu1 %v612_v37  ;;  %3056 = vmatmul.mubr.f32.gmra.mxu0 %v4017_v16 }
  0x82   :  { %3112 = vmatmul.mubr.f32.gmra.mxu1 %v4017_v16  ;;  %3058 = vmatprep.mubr.f32.mxu0 %v4009_v14 }
  0x83   :  { %3114 = vmatprep.mubr.f32.mxu1 %v4009_v14  ;;  %3132 = vmatprep.subr.mxu0 %v3979_v7 }
  0x84   :  { %2522 = vmatprep.subr.mxu1 %v627_v38  ;;  %3133 = vmatpush3.msra.mxu0 %v3979_v7  ;;  %v641_v38 = vld [vmem:[#allocation8 + $0x150] sm:$0xff] }
  0x85   :  { %2523 = vmatpush3.msra.mxu1 %v611_v39  ;;  %3059 = vmatmul.mubr.f32.gmra.mxu0 %v4001_v12 }
  0x86   :  { %3115 = vmatmul.mubr.f32.gmra.mxu1 %v4001_v12  ;;  %3061 = vmatprep.mubr.f32.mxu0 %v3993_v10 }
  0x87   :  { %3117 = vmatprep.mubr.f32.mxu1 %v3993_v10  ;;  %3134 = vmatprep.subr.mxu0 %v3987_v9  ;;  %v645_v10 = vld [vmem:[#allocation8 + $0x170] sm:$0xff] }
  0x88   :  { %2524 = vmatprep.subr.mxu1 %v626_v40  ;;  %3135 = vmatpush3.msra.mxu0 %v3987_v9  ;;  %v640_v40 = vld [vmem:[#allocation8 + $0x148] sm:$0xff] }
  0x89   :  { %2525 = vmatpush3.msra.mxu1 %v610_v41  ;;  %3062 = vmatmul.mubr.f32.gmra.mxu0 %v3985_v8 }
  0x8a   :  { %3118 = vmatmul.mubr.f32.gmra.mxu1 %v3985_v8  ;;  %3064 = vmatprep.mubr.f32.mxu0 %v3977_v6 }
  0x8b   :  { %3120 = vmatprep.mubr.f32.mxu1 %v3977_v6  ;;  %3136 = vmatprep.subr.mxu0 %v3995_v11 }
  0x8c   :  { %2526 = vmatprep.subr.mxu1 %v625_v42  ;;  %3137 = vmatpush3.msra.mxu0 %v3995_v11  ;;  %v639_v42 = vld [vmem:[#allocation8 + $0x140] sm:$0xff] }
  0x8d   :  { %2527 = vmatpush3.msra.mxu1 %v609_v43  ;;  %3065 = vmatmul.mubr.f32.gmra.mxu0 %v3969_v4 }
  0x8e   :  { %3121 = vmatmul.mubr.f32.gmra.mxu1 %v3969_v4  ;;  %3067 = vmatprep.mubr.f32.mxu0 %v3961_v2 }
  0x8f   :  { %3123 = vmatprep.mubr.f32.mxu1 %v3961_v2  ;;  %3138 = vmatprep.subr.mxu0 %v4003_v13 }
  0x90   :  { %2528 = vmatprep.subr.mxu1 %v624_v44  ;;  %3139 = vmatpush3.msra.mxu0 %v4003_v13 }
  0x91   :  { %2529 = vmatpush3.msra.mxu1 %v608_v45  ;;  %3068 = vmatmul.mubr.f32.gmra.mxu0 %v3957_v0  ;;  %v638_v45 = vld [vmem:[#allocation8 + $0x138] sm:$0xff] }
  0x92   :  { %3124 = vmatmul.mubr.f32.gmra.mxu1 %v3957_v0  ;;  %3140 = vmatprep.subr.mxu0 %v4011_v15  ;;  %v646_v0 = vld [vmem:[#allocation8 + $0x178] sm:$0xff] }
  0x93   :  { %2530 = vmatprep.subr.mxu1 %v623_v46  ;;  %3141 = vmatpush3.msra.mxu0 %v4011_v15 }
  0x94   :  { %2531 = vmatpush3.msra.mxu1 %v607_v47  ;;  %3142 = vmatprep.subr.mxu0 %v4019_v17  ;;  %v637_v47 = vld [vmem:[#allocation8 + $0x130] sm:$0xff] }
  0x95   :  { %2532 = vmatprep.subr.mxu1 %v622_v48  ;;  %3143 = vmatpush3.msra.mxu0 %v4019_v17 }
  0x96   :  { %2533 = vmatpush3.msra.mxu1 %v606_v49  ;;  %3144 = vmatprep.subr.mxu0 %v4027_v19  ;;  %v636_v49 = vld [vmem:[#allocation8 + $0x128] sm:$0xff] }
  0x97   :  { %2534 = vmatprep.subr.mxu1 %v621_v50  ;;  %3145 = vmatpush3.msra.mxu0 %v4027_v19 }
  0x98   :  { %2535 = vmatpush3.msra.mxu1 %v605_v51  ;;  %3146 = vmatprep.subr.mxu0 %v4035_v21 }
  0x99   :  { %2536 = vmatprep.subr.mxu1 %v620_v52  ;;  %3147 = vmatpush3.msra.mxu0 %v4035_v21  ;;  %v635_v52 = vld [vmem:[#allocation8 + $0x120] sm:$0xff] }
  0x9a   :  { %2537 = vmatpush3.msra.mxu1 %v604_v53  ;;  %3148 = vmatprep.subr.mxu0 %v4043_v23  ;;  %v634_v53 = vld [vmem:[#allocation8 + $0x118] sm:$0xff] }
  0x9b   :  { %2538 = vmatprep.subr.mxu1 %v619_v54  ;;  %3149 = vmatpush3.msra.mxu0 %v4043_v23 }
  0x9c   :  { %2539 = vmatpush3.msra.mxu1 %v603_v55  ;;  %3150 = vmatprep.subr.mxu0 %v4051_v25 }
  0x9d   :  { %2540 = vmatprep.subr.mxu1 %v618_v56  ;;  %3151 = vmatpush3.msra.mxu0 %v4051_v25 }
  0x9e   :  { %2541 = vmatpush3.msra.mxu1 %v602_v57  ;;  %3152 = vmatprep.subr.mxu0 %v4059_v27 }
  0x9f   :  { %2542 = vmatprep.subr.mxu1 %v617_v58  ;;  %3153 = vmatpush3.msra.mxu0 %v4059_v27 }
  0xa0   :  { %2543 = vmatpush3.msra.mxu1 %v601_v59  ;;  %3154 = vmatprep.subr.mxu0 %v4067_v29 }
  0xa1   :  { %3155 = vmatpush3.msra.mxu0 %v4067_v29  ;;  %2544 = vmatprep.subr.mxu1 %v616_v60 }
  0xa2   :  { %3156 = vmatprep.subr.mxu0 %v4075_v31  ;;  %2545 = vmatpush3.msra.mxu1 %v600_v61 }
  0xa3   :  { %3157 = vmatpush3.msra.mxu0 %v4075_v31  ;;  %2546 = vmatprep.subr.mxu1 %v615_v62 }
  0xa4   :  { %2547 = vmatpush3.msra.mxu1 %v599_v63  ;;  %3182 = vmatprep.subr.mxu0 %v646_v0 }
 0x135   :  { %v4149_v2 = vpop.f32.mrf.mxu0 }
 0x136   :  { %v3104_v4 = vpop.f32.mrf.mxu1 }
 0x137   :  { %v4151_v6 = vpop.f32.mrf.mxu0 }
 0x138   :  { %4822 = vst [vmem:[#allocation20_spill] sm:$0xff] %v4151_v6  ;;  %v375_v8 = vpop.f32.mrf.mxu1  ;;  %3158 = vmatprep.mubr.f32.mxu0 %v4151_v6 }
 0x139   :  { %718 = vmatprep.mubr.f32.mxu1 %v375_v8  ;;  %v4154_v12 = vpop.f32.mrf.mxu0  ;;  %3159 = vmatmul.mubr.f32.vlgmr.msra.gmra.mxu0 %v4149_v2 }
 0x13a   :  { %719 = vmatmul.mubr.f32.vlgmr.msra.gmra.mxu1 %v4075_v31  ;;  %v3107_v14 = vpop.f32.mrf.mxu1  ;;  %3183 = vmatpush3.msra.mxu0 %v646_v0 }
 0x13b   :  { %723 = vmatprep.mubr.f32.mxu1 %v3104_v4  ;;  %v4158_v16 = vpop.f32.mrf.mxu0  ;;  %3184 = vmatprep.subr.mxu0 %v645_v10 }
 0x13c   :  { %v385_v18 = vpop.f32.mrf.mxu1  ;;  %3161 = vmatprep.mubr.f32.mxu0 %v4158_v16  ;;  %3185 = vmatpush3.msra.mxu0 %v645_v10 }
 0x13d   :  { %v4161_v32 = vpop.f32.mrf.mxu0  ;;  %3162 = vmatmul.mubr.f32.gmra.mxu0 %v4154_v12  ;;  %3186 = vmatprep.subr.mxu0 %v644_v20 }
 0x13e   :  { %724 = vmatmul.mubr.f32.gmra.mxu1 %v4067_v29  ;;  %v3110_v34 = vpop.f32.mrf.mxu1  ;;  %3187 = vmatpush3.msra.mxu0 %v644_v20 }
 0x13f   :  { %728 = vmatprep.mubr.f32.mxu1 %v385_v18  ;;  %v4165_v31 = vpop.f32.mrf.mxu0  ;;  %3188 = vmatprep.subr.mxu0 %v643_v33 }
 0x140   :  { %3164 = vmatprep.mubr.f32.mxu0 %v4165_v31  ;;  %3189 = vmatpush3.msra.mxu0 %v643_v33  ;;  %v395_v37 = vpop.f32.mrf.mxu1 }
 0x141   :  { %v4168_v36 = vpop.f32.mrf.mxu0  ;;  %3165 = vmatmul.mubr.f32.gmra.mxu0 %v4161_v32  ;;  %3190 = vmatprep.subr.mxu0 %v642_v35 }
 0x142   :  { %729 = vmatmul.mubr.f32.gmra.mxu1 %v4059_v27  ;;  %3191 = vmatpush3.msra.mxu0 %v642_v35  ;;  %v3113_v41 = vpop.f32.mrf.mxu1 }
 0x143   :  { %733 = vmatprep.mubr.f32.mxu1 %v3107_v14  ;;  %v4172_v29 = vpop.f32.mrf.mxu0  ;;  %3192 = vmatprep.subr.mxu0 %v641_v38 }
 0x144   :  { %3167 = vmatprep.mubr.f32.mxu0 %v4172_v29  ;;  %3193 = vmatpush3.msra.mxu0 %v641_v38  ;;  %v405_v44 = vpop.f32.mrf.mxu1 }
 0x145   :  { %v4175_v39 = vpop.f32.mrf.mxu0  ;;  %3168 = vmatmul.mubr.f32.gmra.mxu0 %v4168_v36  ;;  %3194 = vmatprep.subr.mxu0 %v640_v40 }
 0x146   :  { %4823 = vst [vmem:[#allocation21_spill] sm:$0xff] %v4175_v39  ;;  %734 = vmatmul.mubr.f32.gmra.mxu1 %v4051_v25  ;;  %3195 = vmatpush3.msra.mxu0 %v640_v40  ;;  %v3116_v48 = vpop.f32.mrf.mxu1 }
 0x147   :  { %738 = vmatprep.mubr.f32.mxu1 %v395_v37  ;;  %v4179_v27 = vpop.f32.mrf.mxu0  ;;  %3196 = vmatprep.subr.mxu0 %v639_v42 }
 0x148   :  { %4824 = vst [vmem:[#allocation22_spill] sm:$0xff] %v4179_v27  ;;  %3170 = vmatprep.mubr.f32.mxu0 %v4179_v27  ;;  %3197 = vmatpush3.msra.mxu0 %v639_v42  ;;  %v415_v51 = vpop.f32.mrf.mxu1 }
 0x149   :  { %v4182_v43 = vpop.f32.mrf.mxu0  ;;  %3171 = vmatmul.mubr.f32.gmra.mxu0 %v4175_v39  ;;  %3198 = vmatprep.subr.mxu0 %v638_v45 }
 0x14a   :  { %4825 = vst [vmem:[#allocation23_spill] sm:$0xff] %v4182_v43  ;;  %739 = vmatmul.mubr.f32.gmra.mxu1 %v4043_v23  ;;  %3199 = vmatpush3.msra.mxu0 %v638_v45  ;;  %v3119_v54 = vpop.f32.mrf.mxu1 }
 0x14b   :  { %743 = vmatprep.mubr.f32.mxu1 %v3110_v34  ;;  %v4186_v25 = vpop.f32.mrf.mxu0  ;;  %3200 = vmatprep.subr.mxu0 %v637_v47 }
 0x14c   :  { %4826 = vst [vmem:[#allocation24_spill] sm:$0xff] %v4186_v25  ;;  %3173 = vmatprep.mubr.f32.mxu0 %v4186_v25  ;;  %3201 = vmatpush3.msra.mxu0 %v637_v47  ;;  %v425_v55 = vpop.f32.mrf.mxu1 }
 0x14d   :  { %v4189_v46 = vpop.f32.mrf.mxu0  ;;  %3174 = vmatmul.mubr.f32.gmra.mxu0 %v4182_v43  ;;  %3202 = vmatprep.subr.mxu0 %v636_v49 }
 0x14e   :  { %4827 = vst [vmem:[#allocation25_spill] sm:$0xff] %v4189_v46  ;;  %744 = vmatmul.mubr.f32.gmra.mxu1 %v4035_v21  ;;  %3203 = vmatpush3.msra.mxu0 %v636_v49  ;;  %v3122_v56 = vpop.f32.mrf.mxu1 }
 0x14f   :  { %748 = vmatprep.mubr.f32.mxu1 %v405_v44  ;;  %v4193_v23 = vpop.f32.mrf.mxu0  ;;  %3204 = vmatprep.subr.mxu0 %v635_v52 }
 0x150   :  { %4828 = vst [vmem:[#allocation26_spill] sm:$0xff] %v4193_v23  ;;  %3176 = vmatprep.mubr.f32.mxu0 %v4193_v23  ;;  %3205 = vmatpush3.msra.mxu0 %v635_v52 }
 0x151   :  { %v4196_v50 = vpop.f32.mrf.mxu0  ;;  %3177 = vmatmul.mubr.f32.gmra.mxu0 %v4189_v46  ;;  %3206 = vmatprep.subr.mxu0 %v634_v53 }
 0x152   :  { %4829 = vst [vmem:[#allocation27_spill] sm:$0xff] %v4196_v50  ;;  %749 = vmatmul.mubr.f32.gmra.mxu1 %v4027_v19  ;;  %v633_v19 = vld [vmem:[#allocation8 + $0x110] sm:$0xff]  ;;  %3207 = vmatpush3.msra.mxu0 %v634_v53 }
 0x153   :  { %753 = vmatprep.mubr.f32.mxu1 %v3113_v41  ;;  %v4200_v21 = vpop.f32.mrf.mxu0  ;;  %3208 = vmatprep.subr.mxu0 %v633_v19 }
 0x154   :  { %4830 = vst [vmem:[#allocation28_spill] sm:$0xff] %v4200_v21  ;;  %3179 = vmatprep.mubr.f32.mxu0 %v4200_v21  ;;  %3209 = vmatpush3.msra.mxu0 %v633_v19 }
 0x155   :  { %3180 = vmatmul.mubr.f32.gmra.mxu0 %v4196_v50 }
 0x156   :  { %754 = vmatmul.mubr.f32.gmra.mxu1 %v4019_v17  ;;  %v435_v17 = vpop.f32.mrf.mxu1 }
 0x157   :  { %758 = vmatprep.mubr.f32.mxu1 %v415_v51 }
 0x158   :  { %v3125_v57 = vpop.f32.mrf.mxu1 }
 0x15a   :  { %759 = vmatmul.mubr.f32.gmra.mxu1 %v4011_v15  ;;  %v445_v15 = vpop.f32.mrf.mxu1 }
 0x15b   :  { %763 = vmatprep.mubr.f32.mxu1 %v3116_v48 }
 0x15e   :  { %764 = vmatmul.mubr.f32.gmra.mxu1 %v4003_v13 }
 0x15f   :  { %768 = vmatprep.mubr.f32.mxu1 %v425_v55 }
 0x162   :  { %769 = vmatmul.mubr.f32.gmra.mxu1 %v3995_v11  ;;  %v632_v11 = vld [vmem:[#allocation8 + $0x108] sm:$0xff] }
 0x163   :  { %773 = vmatprep.mubr.f32.mxu1 %v3119_v54  ;;  %3210 = vmatprep.subr.mxu0 %v632_v11 }
 0x164   :  { %3211 = vmatpush3.msra.mxu0 %v632_v11 }
 0x166   :  { %774 = vmatmul.mubr.f32.gmra.mxu1 %v3987_v9  ;;  %v631_v9 = vld [vmem:[#allocation8 + $0x100] sm:$0xff] }
 0x167   :  { %778 = vmatprep.mubr.f32.mxu1 %v435_v17  ;;  %3212 = vmatprep.subr.mxu0 %v631_v9 }
 0x168   :  { %3213 = vmatpush3.msra.mxu0 %v631_v9 }
 0x16a   :  { %779 = vmatmul.mubr.f32.gmra.mxu1 %v3979_v7 }
 0x16b   :  { %783 = vmatprep.mubr.f32.mxu1 %v3122_v56 }
 0x16e   :  { %784 = vmatmul.mubr.f32.gmra.mxu1 %v3971_v5 }
 0x16f   :  { %788 = vmatprep.mubr.f32.mxu1 %v445_v15 }
 0x172   :  { %789 = vmatmul.mubr.f32.gmra.mxu1 %v3965_v3 }
 0x173   :  { %793 = vmatprep.mubr.f32.mxu1 %v3125_v57 }
 0x176   :  { %794 = vmatmul.mubr.f32.gmra.mxu1 %v3959_v1 }
 0x177   :  { %3326 = vmatprep.mubr.f32.mxu1 %v4151_v6 }
 0x1f9   :  { %v3160_v13 = vpop.f32.mrf.mxu0 }
 0x1fa   :  { %v4214_v7 = vpop.f32.mrf.mxu1 }
 0x1fb   :  { %v520_v58 = vpop.f32.mrf.mxu0 }
 0x1fc   :  { %v4216_v59 = vpop.f32.mrf.mxu1  ;;  %3214 = vmatprep.mubr.f32.mxu0 %v520_v58 }
 0x1fd   :  { %v3163_v5 = vpop.f32.mrf.mxu0  ;;  %3215 = vmatmul.mubr.f32.vlgmr.msra.gmra.mxu0 %v3160_v13 }
 0x1fe   :  { %v2551_v3 = vpop.f32.mrf.mxu1 }
 0x1ff   :  { %v530_v60 = vpop.f32.mrf.mxu0 }
 0x200   :  { %v2552_v1 = vpop.f32.mrf.mxu1  ;;  %3217 = vmatprep.mubr.f32.mxu0 %v530_v60 }
 0x201   :  { %v4218_v61 = vadd.f32 %v2552_v1, %v2551_v3  ;;  %v3166_v62 = vpop.f32.mrf.mxu0  ;;  %3218 = vmatmul.mubr.f32.gmra.mxu0 %v3163_v5 }
 0x202   :  { %v2554_v63 = vpop.f32.mrf.mxu1 }
 0x203   :  { %v540_v0 = vpop.f32.mrf.mxu0 }
 0x204   :  { %v2555_v4 = vpop.f32.mrf.mxu1  ;;  %3220 = vmatprep.mubr.f32.mxu0 %v540_v0 }
 0x205   :  { %v4220_v8 = vadd.f32 %v2555_v4, %v2554_v63  ;;  %v3169_v10 = vpop.f32.mrf.mxu0  ;;  %3221 = vmatmul.mubr.f32.gmra.mxu0 %v3166_v62 }
 0x206   :  { %v2557_v14 = vpop.f32.mrf.mxu1 }
 0x207   :  { %v550_v18 = vpop.f32.mrf.mxu0 }
 0x208   :  { %v2558_v20 = vpop.f32.mrf.mxu1  ;;  %3223 = vmatprep.mubr.f32.mxu0 %v550_v18 }
 0x209   :  { %v4222_v33 = vadd.f32 %v2558_v20, %v2557_v14  ;;  %v3172_v34 = vpop.f32.mrf.mxu0  ;;  %3224 = vmatmul.mubr.f32.gmra.mxu0 %v3169_v10 }
 0x20a   :  { %v2560_v35 = vpop.f32.mrf.mxu1 }
 0x20b   :  { %v560_v37 = vpop.f32.mrf.mxu0 }
 0x20c   :  { %v2561_v38 = vpop.f32.mrf.mxu1  ;;  %3226 = vmatprep.mubr.f32.mxu0 %v560_v37 }
 0x20d   :  { %v4224_v40 = vadd.f32 %v2561_v38, %v2560_v35  ;;  %v3175_v41 = vpop.f32.mrf.mxu0  ;;  %3227 = vmatmul.mubr.f32.gmra.mxu0 %v3172_v34 }
 0x20e   :  { %v4227_v49 = vpop.f32.mrf.mxu1 }
 0x20f   :  { %v570_v42 = vpop.f32.mrf.mxu0 }
 0x210   :  { %3229 = vmatprep.mubr.f32.mxu0 %v570_v42  ;;  %v4229_v51 = vpop.f32.mrf.mxu1 }
 0x211   :  { %v3178_v44 = vpop.f32.mrf.mxu0  ;;  %3230 = vmatmul.mubr.f32.gmra.mxu0 %v3175_v41 }
 0x212   :  { %v4231_v52 = vpop.f32.mrf.mxu1 }
 0x213   :  { %v580_v45 = vpop.f32.mrf.mxu0 }
 0x214   :  { %3232 = vmatprep.mubr.f32.mxu0 %v580_v45  ;;  %v4233_v53 = vpop.f32.mrf.mxu1 }
 0x215   :  { %v3181_v47 = vpop.f32.mrf.mxu0  ;;  %3233 = vmatmul.mubr.f32.gmra.mxu0 %v3178_v44 }
 0x216   :  { %v4235_v54 = vpop.f32.mrf.mxu1 }
 0x217   :  { %v590_v48 = vpop.f32.mrf.mxu0 }
 0x218   :  { %3235 = vmatprep.mubr.f32.mxu0 %v590_v48  ;;  %v4237_v19 = vpop.f32.mrf.mxu1  ;;  %v4258_v48 = vld [vmem:[%s4790_s4] ss:$0 sm:$0xff] }
 0x219   :  { %3236 = vmatmul.mubr.f32.gmra.mxu0 %v3181_v47 }
 0x21a   :  { %3270 = vmatprep.mubr.f32.mxu0 %v4073_v30  ;;  %v2572_v55 = vpop.f32.mrf.mxu1 }
 0x21c   :  { %v2573_v56 = vpop.f32.mrf.mxu1 }
 0x21e   :  { %v2575_v17 = vpop.f32.mrf.mxu1 }
 0x220   :  { %v2576_v57 = vpop.f32.mrf.mxu1 }
 0x222   :  { %v2578_v15 = vpop.f32.mrf.mxu1 }
 0x224   :  { %v2579_v11 = vpop.f32.mrf.mxu1 }
 0x226   :  { %v2581_v9 = vpop.f32.mrf.mxu1 }
 0x228   :  { %v2582_v30 = vpop.f32.mrf.mxu1 }
 0x229   :  { %v2583_v27 = vadd.f32 %v2582_v30, %v2581_v9  ;;  %v741_v30 = vadd.f32 %v4224_v40, %v4258_v48  ;;  %v2550_v40 = vadd.f32 %v4216_v59, %v4214_v7 }
 0x22a   :  { %v2584_v13 = vpop.f32.mrf.mxu1 }
 0x22b   :  { %v721_v59 = vadd.f32 %v2550_v40, %v4258_v48  ;;  %v4437_v40 = vld [vmem:[#allocation2 + $0x70] sm:$0xff] }
 0x22c   :  { %v2585_v58 = vpop.f32.mrf.mxu1  ;;  %4843 = vst [vmem:[#allocation33_spill] sm:$0xff] %v4437_v40 }
 0x22d   :  { %v2586_v23 = vadd.f32 %v2585_v58, %v2584_v13  ;;  %v736_v58 = vadd.f32 %v4222_v33, %v4258_v48  ;;  %v731_v33 = vadd.f32 %v4220_v8, %v4258_v48  ;;  %v1265_v8 = vld [vmem:[#allocation10 + $0xf8] sm:$0xff] }
 0x22e   :  { %v2587_v3 = vpop.f32.mrf.mxu1 }
 0x230   :  { %v2588_v62 = vpop.f32.mrf.mxu1 }
 0x231   :  { %v2589_v50 = vadd.f32 %v2588_v62, %v2587_v3  ;;  %v2580_v3 = vadd.f32 %v2579_v11, %v2578_v15 }
 0x232   :  { %v2590_v4 = vpop.f32.mrf.mxu1 }
 0x233   :  { %v771_v15 = vadd.f32 %v2580_v3, %v4258_v48  ;;  %v1245_v3 = vld [vmem:[#allocation10 + $0x58] sm:$0xff] }
 0x234   :  { %v2591_v18 = vpop.f32.mrf.mxu1 }
 0x235   :  { %v2592_v47 = vadd.f32 %v2591_v18, %v2590_v4  ;;  %v1248_v18 = vld [vmem:[#allocation10 + $0x70] sm:$0xff] }
 0x236   :  { %v2593_v35 = vpop.f32.mrf.mxu1 }
 0x237   :  { %v791_v25 = vadd.f32 %v2592_v47, %v4258_v48  ;;  %v1277_v47 = vld [vmem:[#allocation10 + $0x158] sm:$0xff] }
 0x238   :  { %v2594_v41 = vpop.f32.mrf.mxu1 }
 0x239   :  { %v2595_v44 = vadd.f32 %v2594_v41, %v2593_v35  ;;  %v786_v35 = vadd.f32 %v2589_v50, %v4258_v48  ;;  %v1246_v41 = vld [vmem:[#allocation10 + $0x60] sm:$0xff] }
 0x23b   :  { %v796_v21 = vadd.f32 %v2595_v44, %v4258_v48  ;;  %v4413_v44 = vld [vmem:[#allocation2 + $0x40] sm:$0xff] }
 0x2bd   :  { %v4239_v5 = vpop.f32.mrf.mxu0 }
 0x2bf   :  { %v4241_v60 = vpop.f32.mrf.mxu0 }
 0x2c1   :  { %v4243_v1 = vpop.f32.mrf.mxu0 }
 0x2c3   :  { %v4245_v63 = vpop.f32.mrf.mxu0 }
 0x2c5   :  { %v4247_v0 = vpop.f32.mrf.mxu0 }
 0x2c7   :  { %v4249_v10 = vpop.f32.mrf.mxu0 }
 0x2c8   :  { %v4347_v62 = vadd.f32 %v4249_v10, %v741_v30  ;;  %v726_v10 = vadd.f32 %v4218_v61, %v4258_v48  ;;  %v4382_v61 = vadd.f32 %v4241_v60, %v721_v59  ;;  %v1249_v60 = vld [vmem:[#allocation10 + $0x78] sm:$0xff]  ;;  %v1243_v30 = vld [vmem:[#allocation10 + $0x48] sm:$0xff]  ;;  %v1242_v59 = vld [vmem:[#allocation10 + $0x40] sm:$0xff] }
 0x2c9   :  { %v4251_v14 = vpop.f32.mrf.mxu0 }
 0x2ca   :  { %v4374_v7 = vadd.f32 %v4239_v5, %v726_v10  ;;  %v1281_v5 = vld [vmem:[#allocation10 + $0x178] sm:$0xff]  ;;  %v1274_v10 = vld [vmem:[#allocation10 + $0x140] sm:$0xff] }
 0x2cb   :  { %v4253_v20 = vpop.f32.mrf.mxu0 }
 0x2cd   :  { %v3228_v34 = vpop.f32.mrf.mxu0 }
 0x2cf   :  { %v905_v37 = vpop.f32.mrf.mxu0 }
 0x2d1   :  { %v3231_v38 = vpop.f32.mrf.mxu0 }
 0x2d3   :  { %v915_v42 = vpop.f32.mrf.mxu0 }
 0x2d5   :  { %v3234_v45 = vpop.f32.mrf.mxu0 }
 0x2d6   :  { %v4271_v13 = vadd.f32 %v3234_v45, %v786_v35  ;;  %v1261_v45 = vld [vmem:[#allocation10 + $0xd8] sm:$0xff]  ;;  %v4417_v35 = vld [vmem:[#allocation2 + $0x48] sm:$0xff] }
 0x2d7   :  { %v925_v6 = vpop.f32.mrf.mxu0 }
 0x2d9   :  { %v3237_v46 = vpop.f32.mrf.mxu0 }
 0x2da   :  { %v4261_v43 = vadd.f32 %v3237_v46, %v796_v21  ;;  %v781_v46 = vadd.f32 %v2586_v23, %v4258_v48  ;;  %v2574_v23 = vadd.f32 %v2573_v56, %v2572_v55  ;;  %v2568_v55 = vadd.f32 %v4233_v53, %v4231_v52 }
 0x2db   :  { %v935_v39 = vpop.f32.mrf.mxu0 }
 0x2dc   :  { %v4265_v4 = vadd.f32 %v935_v39, %v791_v25  ;;  %3238 = vmatprep.subr.mxu0 %v4261_v43  ;;  %3294 = vmatprep.subr.mxu1 %v4261_v43  ;;  %v2577_v39 = vadd.f32 %v2576_v57, %v2575_v17  ;;  %v776_v25 = vadd.f32 %v2583_v27, %v4258_v48 }
 0x2dd   :  { %3239 = vmatpush3.msra.mxu0 %v4261_v43  ;;  %3295 = vmatpush3.msra.mxu1 %v4261_v43  ;;  %v4279_v50 = vadd.f32 %v925_v6, %v781_v46  ;;  %v2571_v6 = vadd.f32 %v4237_v19, %v4235_v54  ;;  %v4295_v17 = vadd.f32 %v915_v42, %v771_v15  ;;  %v4831_v42 = vld [vmem:[#allocation22_spill] sm:$0xff]  ;;  %v4834_v46 = vld [vmem:[#allocation24_spill] sm:$0xff]  ;;  %v4836_v15 = vld [vmem:[#allocation23_spill] sm:$0xff] }
 0x2de   :  { %3240 = vmatprep.subr.mxu0 %v4265_v4  ;;  %3296 = vmatprep.subr.mxu1 %v4265_v4  ;;  %v4285_v21 = vadd.f32 %v3231_v38, %v776_v25  ;;  %v766_v27 = vadd.f32 %v2577_v39, %v4258_v48  ;;  %v761_v57 = vadd.f32 %v2574_v23, %v4258_v48  ;;  %v4409_v38 = vld [vmem:[#allocation2 + $0x38] sm:$0xff]  ;;  %v4421_v39 = vld [vmem:[#allocation2 + $0x50] sm:$0xff] }
 0x2df   :  { %3241 = vmatpush3.msra.mxu0 %v4265_v4  ;;  %3297 = vmatpush3.msra.mxu1 %v4265_v4  ;;  %v2565_v54 = vadd.f32 %v4229_v51, %v4227_v49  ;;  %v756_v19 = vadd.f32 %v2571_v6, %v4258_v48  ;;  %v751_v53 = vadd.f32 %v2568_v55, %v4258_v48  ;;  %v1260_v25 = vld [vmem:[#allocation10 + $0xd0] sm:$0xff] }
 0x2e0   :  { %3242 = vmatprep.subr.mxu0 %v4271_v13  ;;  %3298 = vmatprep.subr.mxu1 %v4271_v13  ;;  %v4303_v56 = vadd.f32 %v3228_v34, %v766_v27  ;;  %v4313_v11 = vadd.f32 %v905_v37, %v761_v57  ;;  %v1247_v34 = vld [vmem:[#allocation10 + $0x68] sm:$0xff]  ;;  %v1278_v37 = vld [vmem:[#allocation10 + $0x160] sm:$0xff]  ;;  %4833 = vst [vmem:[#allocation22_spill] sm:$0xff] %v4417_v35  ;;  %4835 = vst [vmem:[#allocation29_spill] sm:$0xff] %v4421_v39 }
 0x2e1   :  { %3243 = vmatpush3.msra.mxu0 %v4271_v13  ;;  %3299 = vmatpush3.msra.mxu1 %v4271_v13  ;;  %v4320_v52 = vadd.f32 %v4251_v14, %v756_v19  ;;  %v746_v49 = vadd.f32 %v2565_v54, %v4258_v48  ;;  %v4329_v51 = vadd.f32 %v4253_v20, %v751_v53  ;;  %v4401_v20 = vld [vmem:[#allocation2 + $0x28] sm:$0xff]  ;;  %v1276_v23 = vld [vmem:[#allocation10 + $0x150] sm:$0xff]  ;;  %v4429_v57 = vld [vmem:[#allocation2 + $0x60] sm:$0xff] }
 0x2e2   :  { %3244 = vmatprep.subr.mxu0 %v4279_v50  ;;  %3300 = vmatprep.subr.mxu1 %v4279_v50  ;;  %v4367_v14 = vadd.f32 %v4245_v63, %v731_v33  ;;  %v1280_v63 = vld [vmem:[#allocation10 + $0x170] sm:$0xff]  ;;  %4839 = vst [vmem:[#allocation31_spill] sm:$0xff] %v4429_v57  ;;  %v1259_v54 = vld [vmem:[#allocation10 + $0xc8] sm:$0xff]  ;;  %v1258_v33 = vld [vmem:[#allocation10 + $0xc0] sm:$0xff] }
 0x2e3   :  { %3245 = vmatpush3.msra.mxu0 %v4279_v50  ;;  %3301 = vmatpush3.msra.mxu1 %v4279_v50  ;;  %v4336_v9 = vadd.f32 %v4247_v0, %v746_v49  ;;  %v4356_v0 = vadd.f32 %v4243_v1, %v736_v58  ;;  %v1264_v1 = vld [vmem:[#allocation10 + $0xf0] sm:$0xff]  ;;  %v1275_v19 = vld [vmem:[#allocation10 + $0x148] sm:$0xff] }
 0x2e4   :  { %3246 = vmatprep.subr.mxu0 %v4285_v21  ;;  %3302 = vmatprep.subr.mxu1 %v4285_v21  ;;  %v4832_v48 = vld [vmem:[#allocation21_spill] sm:$0xff]  ;;  %v4425_v6 = vld [vmem:[#allocation2 + $0x58] sm:$0xff]  ;;  %v4842_v58 = vld [vmem:[#allocation28_spill] sm:$0xff] }
 0x2e5   :  { %3247 = vmatpush3.msra.mxu0 %v4285_v21  ;;  %3303 = vmatpush3.msra.mxu1 %v4285_v21  ;;  %4837 = vst [vmem:[#allocation30_spill] sm:$0xff] %v4425_v6  ;;  %v1244_v27 = vld [vmem:[#allocation10 + $0x50] sm:$0xff]  ;;  %v4433_v49 = vld [vmem:[#allocation2 + $0x68] sm:$0xff] }
 0x2e6   :  { %3248 = vmatprep.subr.mxu0 %v4295_v17  ;;  %3304 = vmatprep.subr.mxu1 %v4295_v17  ;;  %v4838_v55 = vld [vmem:[#allocation26_spill] sm:$0xff]  ;;  %v4840_v53 = vld [vmem:[#allocation25_spill] sm:$0xff]  ;;  %4841 = vst [vmem:[#allocation32_spill] sm:$0xff] %v4433_v49 }
 0x2e7   :  { %3249 = vmatpush3.msra.mxu0 %v4295_v17  ;;  %3305 = vmatpush3.msra.mxu1 %v4295_v17 }
 0x2e8   :  { %3250 = vmatprep.subr.mxu0 %v4303_v56  ;;  %3306 = vmatprep.subr.mxu1 %v4303_v56 }
 0x2e9   :  { %3251 = vmatpush3.msra.mxu0 %v4303_v56  ;;  %3307 = vmatpush3.msra.mxu1 %v4303_v56 }
 0x2ea   :  { %3252 = vmatprep.subr.mxu0 %v4313_v11  ;;  %3308 = vmatprep.subr.mxu1 %v4313_v11 }
 0x2eb   :  { %3253 = vmatpush3.msra.mxu0 %v4313_v11  ;;  %3309 = vmatpush3.msra.mxu1 %v4313_v11 }
 0x2ec   :  { %3254 = vmatprep.subr.mxu0 %v4320_v52  ;;  %3310 = vmatprep.subr.mxu1 %v4320_v52 }
 0x2ed   :  { %3255 = vmatpush3.msra.mxu0 %v4320_v52  ;;  %3311 = vmatpush3.msra.mxu1 %v4320_v52 }
 0x2ee   :  { %3256 = vmatprep.subr.mxu0 %v4329_v51  ;;  %3312 = vmatprep.subr.mxu1 %v4329_v51 }
 0x2ef   :  { %3257 = vmatpush3.msra.mxu0 %v4329_v51  ;;  %3313 = vmatpush3.msra.mxu1 %v4329_v51 }
 0x2f0   :  { %3258 = vmatprep.subr.mxu0 %v4336_v9  ;;  %3314 = vmatprep.subr.mxu1 %v4336_v9 }
 0x2f1   :  { %3259 = vmatpush3.msra.mxu0 %v4336_v9  ;;  %3315 = vmatpush3.msra.mxu1 %v4336_v9 }
 0x2f2   :  { %3260 = vmatprep.subr.mxu0 %v4347_v62  ;;  %3316 = vmatprep.subr.mxu1 %v4347_v62 }
 0x2f3   :  { %3261 = vmatpush3.msra.mxu0 %v4347_v62  ;;  %3317 = vmatpush3.msra.mxu1 %v4347_v62 }
 0x2f4   :  { %3262 = vmatprep.subr.mxu0 %v4356_v0  ;;  %3318 = vmatprep.subr.mxu1 %v4356_v0 }
 0x2f5   :  { %3263 = vmatpush3.msra.mxu0 %v4356_v0  ;;  %3319 = vmatpush3.msra.mxu1 %v4356_v0 }
 0x2f6   :  { %3264 = vmatprep.subr.mxu0 %v4367_v14  ;;  %3320 = vmatprep.subr.mxu1 %v4367_v14 }
 0x2f7   :  { %3265 = vmatpush3.msra.mxu0 %v4367_v14  ;;  %3321 = vmatpush3.msra.mxu1 %v4367_v14 }
 0x2f8   :  { %3266 = vmatprep.subr.mxu0 %v4374_v7  ;;  %3322 = vmatprep.subr.mxu1 %v4374_v7 }
 0x2f9   :  { %3267 = vmatpush3.msra.mxu0 %v4374_v7  ;;  %3323 = vmatpush3.msra.mxu1 %v4374_v7 }
 0x2fa   :  { %3268 = vmatprep.subr.mxu0 %v4382_v61  ;;  %3324 = vmatprep.subr.mxu1 %v4382_v61 }
 0x2fb   :  { %3269 = vmatpush3.msra.mxu0 %v4382_v61  ;;  %3325 = vmatpush3.msra.mxu1 %v4382_v61 }
 0x2fc   :  { %3271 = vmatmul.mubr.f32.vlgmr.msra.gmra.mxu0 %v4065_v28  ;;  %3327 = vmatmul.mubr.f32.vlgmr.msra.gmra.mxu1 %v4149_v2  ;;  %v1279_v28 = vld [vmem:[#allocation10 + $0x168] sm:$0xff] }
 0x2fd   :  { %3329 = vmatprep.mubr.f32.mxu1 %v4158_v16  ;;  %3273 = vmatprep.mubr.f32.mxu0 %v4057_v26  ;;  %v1263_v26 = vld [vmem:[#allocation10 + $0xe8] sm:$0xff] }
 0x2fe   :  { %2692 = vmatprep.subr.mxu0 %v1265_v8  ;;  %3350 = vmatprep.subr.mxu1 %v1281_v5  ;;  %v4844_v8 = vld [vmem:[#allocation27_spill] sm:$0xff] }
 0x2ff   :  { %2693 = vmatpush3.msra.mxu0 %v1249_v60  ;;  %3351 = vmatpush3.msra.mxu1 %v1281_v5  ;;  %v4441_v5 = vld [vmem:[#allocation2 + $0x78] sm:$0xff] }
 0x300   :  { %3330 = vmatmul.mubr.f32.gmra.mxu1 %v4154_v12  ;;  %3274 = vmatmul.mubr.f32.gmra.mxu0 %v4049_v24  ;;  %v4405_v24 = vld [vmem:[#allocation2 + $0x30] sm:$0xff]  ;;  %4845 = vst [vmem:[#allocation34_spill] sm:$0xff] %v4441_v5  ;;  %v1257_v60 = vld [vmem:[#allocation10 + $0xb8] sm:$0xff] }
 0x301   :  { %3332 = vmatprep.mubr.f32.mxu1 %v4165_v31  ;;  %3276 = vmatprep.mubr.f32.mxu0 %v4041_v22  ;;  %v1262_v22 = vld [vmem:[#allocation10 + $0xe0] sm:$0xff] }
 0x302   :  { %2694 = vmatprep.subr.mxu0 %v1264_v1  ;;  %3352 = vmatprep.subr.mxu1 %v1280_v63  ;;  %v1273_v1 = vld [vmem:[#allocation10 + $0x138] sm:$0xff] }
 0x303   :  { %2695 = vmatpush3.msra.mxu0 %v1248_v18  ;;  %3353 = vmatpush3.msra.mxu1 %v1280_v63  ;;  %v1241_v63 = vld [vmem:[#allocation10 + $0x38] sm:$0xff]  ;;  %v1256_v18 = vld [vmem:[#allocation10 + $0xb0] sm:$0xff] }
 0x304   :  { %3333 = vmatmul.mubr.f32.gmra.mxu1 %v4161_v32  ;;  %3277 = vmatmul.mubr.f32.gmra.mxu0 %v4401_v20 }
 0x305   :  { %3335 = vmatprep.mubr.f32.mxu1 %v4172_v29  ;;  %3279 = vmatprep.mubr.f32.mxu0 %v4405_v24 }
 0x306   :  { %2696 = vmatprep.subr.mxu0 %v1263_v26  ;;  %3354 = vmatprep.subr.mxu1 %v1279_v28  ;;  %v1272_v26 = vld [vmem:[#allocation10 + $0x130] sm:$0xff] }
 0x307   :  { %2697 = vmatpush3.msra.mxu0 %v1247_v34  ;;  %3355 = vmatpush3.msra.mxu1 %v1279_v28  ;;  %v1240_v28 = vld [vmem:[#allocation10 + $0x30] sm:$0xff]  ;;  %v1255_v34 = vld [vmem:[#allocation10 + $0xa8] sm:$0xff] }
 0x308   :  { %3336 = vmatmul.mubr.f32.gmra.mxu1 %v4168_v36  ;;  %3280 = vmatmul.mubr.f32.gmra.mxu0 %v4409_v38 }
 0x309   :  { %3338 = vmatprep.mubr.f32.mxu1 %v4831_v42  ;;  %3282 = vmatprep.mubr.f32.mxu0 %v4413_v44 }
 0x30a   :  { %2698 = vmatprep.subr.mxu0 %v1262_v22  ;;  %3356 = vmatprep.subr.mxu1 %v1278_v37  ;;  %v1271_v22 = vld [vmem:[#allocation10 + $0x128] sm:$0xff] }
 0x30b   :  { %2699 = vmatpush3.msra.mxu0 %v1246_v41  ;;  %3357 = vmatpush3.msra.mxu1 %v1278_v37  ;;  %v1239_v37 = vld [vmem:[#allocation10 + $0x28] sm:$0xff]  ;;  %v1254_v41 = vld [vmem:[#allocation10 + $0xa0] sm:$0xff] }
 0x30c   :  { %3339 = vmatmul.mubr.f32.gmra.mxu1 %v4832_v48  ;;  %3283 = vmatmul.mubr.f32.gmra.mxu0 %v4417_v35 }
 0x30d   :  { %3341 = vmatprep.mubr.f32.mxu1 %v4834_v46  ;;  %3285 = vmatprep.mubr.f32.mxu0 %v4421_v39 }
 0x30e   :  { %2700 = vmatprep.subr.mxu0 %v1261_v45  ;;  %3358 = vmatprep.subr.mxu1 %v1277_v47  ;;  %v1270_v45 = vld [vmem:[#allocation10 + $0x120] sm:$0xff] }
 0x30f   :  { %2701 = vmatpush3.msra.mxu0 %v1245_v3  ;;  %3359 = vmatpush3.msra.mxu1 %v1277_v47  ;;  %v1238_v47 = vld [vmem:[#allocation10 + $0x20] sm:$0xff]  ;;  %v1253_v3 = vld [vmem:[#allocation10 + $0x98] sm:$0xff] }
 0x310   :  { %3342 = vmatmul.mubr.f32.gmra.mxu1 %v4836_v15  ;;  %3286 = vmatmul.mubr.f32.gmra.mxu0 %v4425_v6 }
 0x311   :  { %3344 = vmatprep.mubr.f32.mxu1 %v4838_v55  ;;  %3288 = vmatprep.mubr.f32.mxu0 %v4429_v57  ;;  %v4502_v57 = vld [vmem:[%s4792_s6] ss:$0 sm:$0xff] }
 0x312   :  { %2702 = vmatprep.subr.mxu0 %v1260_v25  ;;  %3360 = vmatprep.subr.mxu1 %v1276_v23  ;;  %v1269_v25 = vld [vmem:[#allocation10 + $0x118] sm:$0xff] }
 0x313   :  { %2703 = vmatpush3.msra.mxu0 %v1244_v27  ;;  %3361 = vmatpush3.msra.mxu1 %v1276_v23  ;;  %v1237_v23 = vld [vmem:[#allocation10 + $0x18] sm:$0xff]  ;;  %v1252_v27 = vld [vmem:[#allocation10 + $0x90] sm:$0xff] }
 0x314   :  { %3345 = vmatmul.mubr.f32.gmra.mxu1 %v4840_v53  ;;  %3289 = vmatmul.mubr.f32.gmra.mxu0 %v4433_v49 }
 0x315   :  { %3347 = vmatprep.mubr.f32.mxu1 %v4842_v58  ;;  %3291 = vmatprep.mubr.f32.mxu0 %v4437_v40 }
 0x316   :  { %2704 = vmatprep.subr.mxu0 %v1259_v54  ;;  %3362 = vmatprep.subr.mxu1 %v1275_v19  ;;  %v1268_v54 = vld [vmem:[#allocation10 + $0x110] sm:$0xff] }
 0x317   :  { %2705 = vmatpush3.msra.mxu0 %v1243_v30  ;;  %3363 = vmatpush3.msra.mxu1 %v1275_v19  ;;  %v1236_v19 = vld [vmem:[#allocation10 + $0x10] sm:$0xff]  ;;  %v1251_v30 = vld [vmem:[#allocation10 + $0x88] sm:$0xff] }
 0x318   :  { %3348 = vmatmul.mubr.f32.gmra.mxu1 %v4844_v8  ;;  %3292 = vmatmul.mubr.f32.gmra.mxu0 %v4441_v5 }
 0x319   :  { %2706 = vmatprep.subr.mxu0 %v1258_v33  ;;  %3364 = vmatprep.subr.mxu1 %v1274_v10  ;;  %v1267_v33 = vld [vmem:[#allocation10 + $0x108] sm:$0xff] }
 0x31a   :  { %2707 = vmatpush3.msra.mxu0 %v1242_v59  ;;  %3365 = vmatpush3.msra.mxu1 %v1274_v10  ;;  %v1235_v10 = vld [vmem:[#allocation10 + $0x8] sm:$0xff]  ;;  %v1250_v59 = vld [vmem:[#allocation10 + $0x80] sm:$0xff] }
 0x31b   :  { %2708 = vmatprep.subr.mxu0 %v1257_v60  ;;  %3366 = vmatprep.subr.mxu1 %v1273_v1  ;;  %v1266_v60 = vld [vmem:[#allocation10 + $0x100] sm:$0xff] }
 0x31c   :  { %2709 = vmatpush3.msra.mxu0 %v1241_v63  ;;  %3367 = vmatpush3.msra.mxu1 %v1273_v1  ;;  %v1234_v1 = vld [vmem:[#allocation10] sm:$0xff] }
 0x31d   :  { %2710 = vmatprep.subr.mxu0 %v1256_v18  ;;  %3368 = vmatprep.subr.mxu1 %v1272_v26 }
 0x31e   :  { %2711 = vmatpush3.msra.mxu0 %v1240_v28  ;;  %3369 = vmatpush3.msra.mxu1 %v1272_v26 }
 0x31f   :  { %2712 = vmatprep.subr.mxu0 %v1255_v34  ;;  %3370 = vmatprep.subr.mxu1 %v1271_v22 }
 0x320   :  { %2713 = vmatpush3.msra.mxu0 %v1239_v37  ;;  %3371 = vmatpush3.msra.mxu1 %v1271_v22 }
 0x321   :  { %2714 = vmatprep.subr.mxu0 %v1254_v41  ;;  %3372 = vmatprep.subr.mxu1 %v1270_v45 }
 0x322   :  { %2715 = vmatpush3.msra.mxu0 %v1238_v47  ;;  %3373 = vmatpush3.msra.mxu1 %v1270_v45 }
 0x323   :  { %2716 = vmatprep.subr.mxu0 %v1253_v3  ;;  %3374 = vmatprep.subr.mxu1 %v1269_v25 }
 0x324   :  { %2717 = vmatpush3.msra.mxu0 %v1237_v23  ;;  %3375 = vmatpush3.msra.mxu1 %v1269_v25 }
 0x325   :  { %2718 = vmatprep.subr.mxu0 %v1252_v27  ;;  %3376 = vmatprep.subr.mxu1 %v1268_v54 }
 0x326   :  { %2719 = vmatpush3.msra.mxu0 %v1236_v19  ;;  %3377 = vmatpush3.msra.mxu1 %v1268_v54 }
 0x327   :  { %2720 = vmatprep.subr.mxu0 %v1251_v30  ;;  %3378 = vmatprep.subr.mxu1 %v1267_v33 }
 0x328   :  { %2721 = vmatpush3.msra.mxu0 %v1235_v10  ;;  %3379 = vmatpush3.msra.mxu1 %v1267_v33 }
 0x329   :  { %2722 = vmatprep.subr.mxu0 %v1250_v59  ;;  %3380 = vmatprep.subr.mxu1 %v1266_v60 }
 0x32a   :  { %2723 = vmatpush3.msra.mxu0 %v1234_v1  ;;  %3381 = vmatpush3.msra.mxu1 %v1266_v60  ;;  %v3671_v1 = vld [vmem:[#allocation2] sm:$0xff] }
 0x3bc   :  { %v3272_v63 = vpop.f32.mrf.mxu0  ;;  %v3328_v18 = vpop.f32.mrf.mxu1 }
 0x3be   :  { %v1010_v26 = vpop.f32.mrf.mxu0  ;;  %v1155_v28 = vpop.f32.mrf.mxu1 }
 0x3bf   :  { %1353 = vmatprep.mubr.f32.mxu0 %v1010_v26  ;;  %3382 = vmatprep.mubr.f32.mxu1 %v1155_v28 }
 0x3c0   :  { %v3331_v34 = vpop.f32.mrf.mxu1  ;;  %1354 = vmatmul.mubr.f32.vlgmr.msra.gmra.mxu0 %v4382_v61  ;;  %3383 = vmatmul.mubr.f32.vlgmr.msra.gmra.mxu1 %v3328_v18  ;;  %v3275_v22 = vpop.f32.mrf.mxu0 }
 0x3c1   :  { %1358 = vmatprep.mubr.f32.mxu0 %v3272_v63 }
 0x3c2   :  { %v1165_v37 = vpop.f32.mrf.mxu1  ;;  %v1020_v41 = vpop.f32.mrf.mxu0 }
 0x3c3   :  { %3385 = vmatprep.mubr.f32.mxu1 %v1165_v37 }
 0x3c4   :  { %v3334_v45 = vpop.f32.mrf.mxu1  ;;  %1359 = vmatmul.mubr.f32.gmra.mxu0 %v4374_v7  ;;  %3386 = vmatmul.mubr.f32.gmra.mxu1 %v3331_v34  ;;  %v3278_v3 = vpop.f32.mrf.mxu0 }
 0x3c5   :  { %1363 = vmatprep.mubr.f32.mxu0 %v1020_v41 }
 0x3c6   :  { %v1175_v47 = vpop.f32.mrf.mxu1  ;;  %v1030_v23 = vpop.f32.mrf.mxu0 }
 0x3c7   :  { %3388 = vmatprep.mubr.f32.mxu1 %v1175_v47 }
 0x3c8   :  { %v3337_v25 = vpop.f32.mrf.mxu1  ;;  %1364 = vmatmul.mubr.f32.gmra.mxu0 %v4367_v14  ;;  %3389 = vmatmul.mubr.f32.gmra.mxu1 %v3334_v45  ;;  %v3281_v7 = vpop.f32.mrf.mxu0 }
 0x3c9   :  { %1368 = vmatprep.mubr.f32.mxu0 %v3275_v22 }
 0x3ca   :  { %v1185_v61 = vpop.f32.mrf.mxu1  ;;  %v1040_v14 = vpop.f32.mrf.mxu0 }
 0x3cb   :  { %3391 = vmatprep.mubr.f32.mxu1 %v1185_v61 }
 0x3cc   :  { %v3340_v27 = vpop.f32.mrf.mxu1  ;;  %1369 = vmatmul.mubr.f32.gmra.mxu0 %v4356_v0  ;;  %3392 = vmatmul.mubr.f32.gmra.mxu1 %v3337_v25  ;;  %v3284_v0 = vpop.f32.mrf.mxu0 }
 0x3cd   :  { %1373 = vmatprep.mubr.f32.mxu0 %v1030_v23 }
 0x3ce   :  { %v1195_v54 = vpop.f32.mrf.mxu1 }
 0x3cf   :  { %3394 = vmatprep.mubr.f32.mxu1 %v1195_v54 }
 0x3d0   :  { %v3343_v19 = vpop.f32.mrf.mxu1  ;;  %1374 = vmatmul.mubr.f32.gmra.mxu0 %v4347_v62  ;;  %3395 = vmatmul.mubr.f32.gmra.mxu1 %v3340_v27  ;;  %v1050_v62 = vpop.f32.mrf.mxu0 }
 0x3d1   :  { %1378 = vmatprep.mubr.f32.mxu0 %v3278_v3 }
 0x3d2   :  { %v1205_v30 = vpop.f32.mrf.mxu1 }
 0x3d3   :  { %3397 = vmatprep.mubr.f32.mxu1 %v1205_v30 }
 0x3d4   :  { %v3346_v33 = vpop.f32.mrf.mxu1  ;;  %1379 = vmatmul.mubr.f32.gmra.mxu0 %v4336_v9  ;;  %3398 = vmatmul.mubr.f32.gmra.mxu1 %v3343_v19  ;;  %v3287_v9 = vpop.f32.mrf.mxu0 }
 0x3d5   :  { %1383 = vmatprep.mubr.f32.mxu0 %v1040_v14 }
 0x3d6   :  { %v1215_v10 = vpop.f32.mrf.mxu1  ;;  %v1060_v63 = vpop.f32.mrf.mxu0 }
 0x3d7   :  { %3400 = vmatprep.mubr.f32.mxu1 %v1215_v10 }
 0x3d8   :  { %v3349_v59 = vpop.f32.mrf.mxu1  ;;  %1384 = vmatmul.mubr.f32.gmra.mxu0 %v4329_v51  ;;  %3401 = vmatmul.mubr.f32.gmra.mxu1 %v3346_v33  ;;  %v3290_v51 = vpop.f32.mrf.mxu0 }
 0x3d9   :  { %1388 = vmatprep.mubr.f32.mxu0 %v3281_v7 }
 0x3da   :  { %v1225_v60 = vpop.f32.mrf.mxu1  ;;  %v1070_v18 = vpop.f32.mrf.mxu0 }
 0x3db   :  { %3403 = vmatprep.mubr.f32.mxu1 %v1225_v60 }
 0x3dc   :  { %1389 = vmatmul.mubr.f32.gmra.mxu0 %v4320_v52  ;;  %3404 = vmatmul.mubr.f32.gmra.mxu1 %v3349_v59  ;;  %v3293_v52 = vpop.f32.mrf.mxu0 }
 0x3dd   :  { %1393 = vmatprep.mubr.f32.mxu0 %v1050_v62  ;;  %3438 = vmatprep.mubr.f32.mxu1 %v3671_v1 }
 0x3de   :  { %v1080_v26 = vpop.f32.mrf.mxu0 }
 0x3e0   :  { %1394 = vmatmul.mubr.f32.gmra.mxu0 %v4313_v11 }
 0x3e1   :  { %1398 = vmatprep.mubr.f32.mxu0 %v3284_v0 }
 0x3e4   :  { %1399 = vmatmul.mubr.f32.gmra.mxu0 %v4303_v56  ;;  %v4846_v56 = vld [vmem:[#allocation20_spill] sm:$0xff] }
 0x3e5   :  { %1403 = vmatprep.mubr.f32.mxu0 %v1060_v63 }
 0x3e8   :  { %1404 = vmatmul.mubr.f32.gmra.mxu0 %v4295_v17 }
 0x3e9   :  { %1408 = vmatprep.mubr.f32.mxu0 %v3287_v9 }
 0x3ec   :  { %1409 = vmatmul.mubr.f32.gmra.mxu0 %v4285_v21 }
 0x3ed   :  { %1413 = vmatprep.mubr.f32.mxu0 %v1070_v18 }
 0x3f0   :  { %1414 = vmatmul.mubr.f32.gmra.mxu0 %v4279_v50 }
 0x3f1   :  { %1418 = vmatprep.mubr.f32.mxu0 %v3290_v51 }
 0x3f4   :  { %1419 = vmatmul.mubr.f32.gmra.mxu0 %v4271_v13 }
 0x3f5   :  { %1423 = vmatprep.mubr.f32.mxu0 %v1080_v26 }
 0x3f8   :  { %1424 = vmatmul.mubr.f32.gmra.mxu0 %v4265_v4 }
 0x3f9   :  { %1428 = vmatprep.mubr.f32.mxu0 %v3293_v52 }
 0x3fc   :  { %1429 = vmatmul.mubr.f32.gmra.mxu0 %v4261_v43 }
 0x3fd   :  { %3494 = vmatprep.mubr.f32.mxu0 %v4846_v56 }
 0x480   :  { %v2724_v17 = vpop.f32.mrf.mxu0  ;;  %v4465_v50 = vpop.f32.mrf.mxu1 }
 0x482   :  { %v2725_v11 = vpop.f32.mrf.mxu0  ;;  %v4469_v4 = vpop.f32.mrf.mxu1 }
 0x483   :  { %v4461_v28 = vadd.f32 %v2725_v11, %v2724_v17 }
 0x484   :  { %v2727_v21 = vpop.f32.mrf.mxu0  ;;  %v4473_v3 = vpop.f32.mrf.mxu1 }
 0x486   :  { %v2728_v34 = vpop.f32.mrf.mxu0  ;;  %v4477_v27 = vpop.f32.mrf.mxu1 }
 0x487   :  { %v4463_v22 = vadd.f32 %v2728_v34, %v2727_v21 }
 0x488   :  { %v2730_v37 = vpop.f32.mrf.mxu0  ;;  %v4483_v19 = vpop.f32.mrf.mxu1 }
 0x48a   :  { %v2731_v13 = vpop.f32.mrf.mxu0  ;;  %v4489_v33 = vpop.f32.mrf.mxu1 }
 0x48b   :  { %v4467_v41 = vadd.f32 %v2731_v13, %v2730_v37 }
 0x48c   :  { %v2733_v45 = vpop.f32.mrf.mxu0  ;;  %v4491_v59 = vpop.f32.mrf.mxu1 }
 0x48e   :  { %v2734_v43 = vpop.f32.mrf.mxu0  ;;  %v4493_v1 = vpop.f32.mrf.mxu1 }
 0x48f   :  { %v4471_v47 = vadd.f32 %v2734_v43, %v2733_v45 }
 0x490   :  { %v2736_v25 = vpop.f32.mrf.mxu0  ;;  %v4495_v51 = vpop.f32.mrf.mxu1 }
 0x492   :  { %v2737_v61 = vpop.f32.mrf.mxu0  ;;  %v4497_v26 = vpop.f32.mrf.mxu1 }
 0x493   :  { %v4475_v23 = vadd.f32 %v2737_v61, %v2736_v25 }
 0x494   :  { %v4479_v54 = vpop.f32.mrf.mxu0  ;;  %v3399_v11 = vpop.f32.mrf.mxu1 }
 0x496   :  { %v4481_v7 = vpop.f32.mrf.mxu0  ;;  %v1550_v37 = vpop.f32.mrf.mxu1 }
 0x498   :  { %v4485_v30 = vpop.f32.mrf.mxu0  ;;  %v3402_v43 = vpop.f32.mrf.mxu1 }
 0x49a   :  { %v4487_v14 = vpop.f32.mrf.mxu0  ;;  %v1560_v5 = vpop.f32.mrf.mxu1 }
 0x49c   :  { %v2745_v10 = vpop.f32.mrf.mxu0  ;;  %v3405_v55 = vpop.f32.mrf.mxu1 }
 0x49e   :  { %v2746_v0 = vpop.f32.mrf.mxu0 }
 0x4a0   :  { %v2748_v60 = vpop.f32.mrf.mxu0 }
 0x4a2   :  { %v2749_v62 = vpop.f32.mrf.mxu0 }
 0x4a4   :  { %v2751_v9 = vpop.f32.mrf.mxu0 }
 0x4a6   :  { %v2752_v63 = vpop.f32.mrf.mxu0 }
 0x4a8   :  { %v2754_v18 = vpop.f32.mrf.mxu0 }
 0x4aa   :  { %v2755_v52 = vpop.f32.mrf.mxu0 }
 0x4ac   :  { %v2757_v56 = vpop.f32.mrf.mxu0 }
 0x4ae   :  { %v2758_v17 = vpop.f32.mrf.mxu0 }
 0x4af   :  { %v2759_v46 = vadd.f32 %v2758_v17, %v2757_v56  ;;  %v3674_v56 = vld [vmem:[#allocation2 + $0x18] sm:$0xff] }
 0x4b0   :  { %v2760_v21 = vpop.f32.mrf.mxu0  ;;  %v1883_v17 = vld [vmem:[#allocation11 + $0x70] sm:$0xff] }
 0x4b2   :  { %v2761_v34 = vpop.f32.mrf.mxu0 }
 0x4b3   :  { %v2762_v6 = vadd.f32 %v2761_v34, %v2760_v21  ;;  %v1882_v21 = vld [vmem:[#allocation11 + $0x68] sm:$0xff]  ;;  %v1881_v34 = vld [vmem:[#allocation11 + $0x60] sm:$0xff] }
 0x4b4   :  { %v2763_v13 = vpop.f32.mrf.mxu0 }
 0x4b6   :  { %v2764_v45 = vpop.f32.mrf.mxu0 }
 0x4b7   :  { %v2765_v49 = vadd.f32 %v2764_v45, %v2763_v13  ;;  %v4849_v13 = vld [vmem:[#allocation24_spill] sm:$0xff]  ;;  %v4852_v45 = vld [vmem:[#allocation30_spill] sm:$0xff] }
 0x4b8   :  { %v2766_v25 = vpop.f32.mrf.mxu0 }
 0x4b9   :  { %v1421_v35 = vadd.f32 %v2765_v49, %v4502_v57 }
 0x4ba   :  { %v2767_v61 = vpop.f32.mrf.mxu0 }
 0x4bb   :  { %v2768_v40 = vadd.f32 %v2767_v61, %v2766_v25  ;;  %v1570_v25 = vpop.f32.mrf.mxu1  ;;  %v2756_v61 = vadd.f32 %v2755_v52, %v2754_v18  ;;  %v4517_v49 = vadd.f32 %v3402_v43, %v1421_v35  ;;  %v2747_v35 = vadd.f32 %v2746_v0, %v2745_v10  ;;  %v1899_v52 = vld [vmem:[#allocation11 + $0xf0] sm:$0xff] }
 0x4bc   :  { %v2769_v8 = vpop.f32.mrf.mxu0  ;;  %v2741_v10 = vadd.f32 %v4481_v7, %v4479_v54  ;;  %v1879_v43 = vld [vmem:[#allocation11 + $0x50] sm:$0xff] }
 0x4bd   :  { %v1426_v15 = vadd.f32 %v2768_v40, %v4502_v57  ;;  %v1411_v40 = vadd.f32 %v2759_v46, %v4502_v57  ;;  %v1391_v0 = vadd.f32 %v2747_v35, %v4502_v57  ;;  %v4857_v35 = vld [vmem:[#allocation28_spill] sm:$0xff] }
 0x4be   :  { %v2770_v58 = vpop.f32.mrf.mxu0  ;;  %v1381_v54 = vadd.f32 %v2741_v10, %v4502_v57  ;;  %v1877_v10 = vld [vmem:[#allocation11 + $0x40] sm:$0xff] }
 0x4bf   :  { %v2771_v53 = vadd.f32 %v2770_v58, %v2769_v8  ;;  %v1416_v58 = vadd.f32 %v2762_v6, %v4502_v57  ;;  %v4510_v8 = vadd.f32 %v1570_v25, %v1426_v15  ;;  %v1406_v15 = vadd.f32 %v2756_v61, %v4502_v57  ;;  %v4853_v25 = vld [vmem:[#allocation26_spill] sm:$0xff]  ;;  %v4854_v61 = vld [vmem:[#allocation31_spill] sm:$0xff] }
 0x4c0   :  { %v4566_v7 = vadd.f32 %v4491_v59, %v1391_v0  ;;  %v1371_v59 = vadd.f32 %v4471_v47, %v4502_v57  ;;  %v4584_v18 = vadd.f32 %v4483_v19, %v1381_v54  ;;  %v1361_v47 = vadd.f32 %v4463_v22, %v4502_v57  ;;  %v4859_v0 = vld [vmem:[#allocation27_spill] sm:$0xff] }
 0x4c1   :  { %v1431_v39 = vadd.f32 %v2771_v53, %v4502_v57  ;;  %v2753_v53 = vadd.f32 %v2752_v63, %v2751_v9  ;;  %v4524_v6 = vadd.f32 %v1560_v5, %v1416_v58  ;;  %v2744_v5 = vadd.f32 %v4487_v14, %v4485_v30  ;;  %v1894_v58 = vld [vmem:[#allocation11 + $0xc8] sm:$0xff]  ;;  %v1892_v54 = vld [vmem:[#allocation11 + $0xb8] sm:$0xff] }
 0x4c2   :  { %v1376_v63 = vadd.f32 %v4475_v23, %v4502_v57  ;;  %v1366_v23 = vadd.f32 %v4467_v41, %v4502_v57  ;;  %v4602_v19 = vadd.f32 %v4473_v3, %v1371_v59  ;;  %v1356_v41 = vadd.f32 %v4461_v28, %v4502_v57  ;;  %v1900_v28 = vld [vmem:[#allocation11 + $0xf8] sm:$0xff] }
 0x4c3   :  { %v4507_v48 = vadd.f32 %v3405_v55, %v1431_v39  ;;  %v2750_v39 = vadd.f32 %v2749_v62, %v2748_v60  ;;  %v1401_v46 = vadd.f32 %v2753_v53, %v4502_v57  ;;  %v4531_v55 = vadd.f32 %v3399_v11, %v1411_v40  ;;  %v1884_v3 = vld [vmem:[#allocation11 + $0x78] sm:$0xff]  ;;  %v1910_v53 = vld [vmem:[#allocation11 + $0x148] sm:$0xff] }
 0x4c4   :  { %v4540_v62 = vadd.f32 %v1550_v37, %v1406_v15  ;;  %v1386_v30 = vadd.f32 %v2744_v5, %v4502_v57  ;;  %v4618_v22 = vadd.f32 %v4465_v50, %v1361_v47  ;;  %v1916_v50 = vld [vmem:[#allocation11 + $0x178] sm:$0xff]  ;;  %v4855_v40 = vld [vmem:[#allocation25_spill] sm:$0xff]  ;;  %v1893_v5 = vld [vmem:[#allocation11 + $0xc0] sm:$0xff] }
 0x4c5   :  { %3406 = vmatprep.subr.mxu1 %v4507_v48  ;;  %3462 = vmatprep.subr.mxu0 %v4507_v48  ;;  %v1396_v60 = vadd.f32 %v2750_v39, %v4502_v57  ;;  %v4550_v9 = vadd.f32 %v4495_v51, %v1401_v46  ;;  %v4625_v57 = vadd.f32 %v4469_v4, %v1356_v41  ;;  %v3672_v4 = vld [vmem:[#allocation2 + $0x8] sm:$0xff]  ;;  %v3675_v11 = vld [vmem:[#allocation2 + $0x20] sm:$0xff]  ;;  %v1907_v47 = vld [vmem:[#allocation11 + $0x130] sm:$0xff] }
 0x4c6   :  { %3407 = vmatpush3.msra.mxu1 %v4507_v48  ;;  %3463 = vmatpush3.msra.mxu0 %v4507_v48  ;;  %v4575_v51 = vadd.f32 %v4493_v1, %v1386_v30  ;;  %v4593_v1 = vadd.f32 %v4489_v33, %v1376_v63  ;;  %v4611_v33 = vadd.f32 %v4477_v27, %v1366_v23  ;;  %v3673_v27 = vld [vmem:[#allocation2 + $0x10] sm:$0xff]  ;;  %v1880_v37 = vld [vmem:[#allocation11 + $0x58] sm:$0xff]  ;;  %v4856_v39 = vld [vmem:[#allocation32_spill] sm:$0xff] }
 0x4c7   :  { %3408 = vmatprep.subr.mxu1 %v4510_v8  ;;  %3464 = vmatprep.subr.mxu0 %v4510_v8  ;;  %v4558_v14 = vadd.f32 %v4497_v26, %v1396_v60  ;;  %v1915_v26 = vld [vmem:[#allocation11 + $0x170] sm:$0xff]  ;;  %v1878_v15 = vld [vmem:[#allocation11 + $0x48] sm:$0xff]  ;;  %v1909_v60 = vld [vmem:[#allocation11 + $0x140] sm:$0xff] }
 0x4c8   :  { %3409 = vmatpush3.msra.mxu1 %v4510_v8  ;;  %3465 = vmatpush3.msra.mxu0 %v4510_v8  ;;  %v4858_v46 = vld [vmem:[#allocation33_spill] sm:$0xff]  ;;  %v4860_v30 = vld [vmem:[#allocation34_spill] sm:$0xff] }
 0x4c9   :  { %3410 = vmatprep.subr.mxu1 %v4517_v49  ;;  %3466 = vmatprep.subr.mxu0 %v4517_v49  ;;  %v1908_v63 = vld [vmem:[#allocation11 + $0x138] sm:$0xff]  ;;  %v1891_v23 = vld [vmem:[#allocation11 + $0xb0] sm:$0xff] }
 0x4ca   :  { %3411 = vmatpush3.msra.mxu1 %v4517_v49  ;;  %3467 = vmatpush3.msra.mxu0 %v4517_v49  ;;  %v1876_v59 = vld [vmem:[#allocation11 + $0x38] sm:$0xff]  ;;  %v1875_v41 = vld [vmem:[#allocation11 + $0x30] sm:$0xff] }
 0x4cb   :  { %3412 = vmatprep.subr.mxu1 %v4524_v6  ;;  %3468 = vmatprep.subr.mxu0 %v4524_v6 }
 0x4cc   :  { %3413 = vmatpush3.msra.mxu1 %v4524_v6  ;;  %3469 = vmatpush3.msra.mxu0 %v4524_v6 }
 0x4cd   :  { %3414 = vmatprep.subr.mxu1 %v4531_v55  ;;  %3470 = vmatprep.subr.mxu0 %v4531_v55 }
 0x4ce   :  { %3415 = vmatpush3.msra.mxu1 %v4531_v55  ;;  %3471 = vmatpush3.msra.mxu0 %v4531_v55 }
 0x4cf   :  { %3416 = vmatprep.subr.mxu1 %v4540_v62  ;;  %3472 = vmatprep.subr.mxu0 %v4540_v62 }
 0x4d0   :  { %3417 = vmatpush3.msra.mxu1 %v4540_v62  ;;  %3473 = vmatpush3.msra.mxu0 %v4540_v62 }
 0x4d1   :  { %3418 = vmatprep.subr.mxu1 %v4550_v9  ;;  %3474 = vmatprep.subr.mxu0 %v4550_v9 }
 0x4d2   :  { %3419 = vmatpush3.msra.mxu1 %v4550_v9  ;;  %3475 = vmatpush3.msra.mxu0 %v4550_v9 }
 0x4d3   :  { %3420 = vmatprep.subr.mxu1 %v4558_v14  ;;  %3476 = vmatprep.subr.mxu0 %v4558_v14 }
 0x4d4   :  { %3421 = vmatpush3.msra.mxu1 %v4558_v14  ;;  %3477 = vmatpush3.msra.mxu0 %v4558_v14 }
 0x4d5   :  { %3422 = vmatprep.subr.mxu1 %v4566_v7  ;;  %3478 = vmatprep.subr.mxu0 %v4566_v7 }
 0x4d6   :  { %3423 = vmatpush3.msra.mxu1 %v4566_v7  ;;  %3479 = vmatpush3.msra.mxu0 %v4566_v7 }
 0x4d7   :  { %3424 = vmatprep.subr.mxu1 %v4575_v51  ;;  %3480 = vmatprep.subr.mxu0 %v4575_v51 }
 0x4d8   :  { %3425 = vmatpush3.msra.mxu1 %v4575_v51  ;;  %3481 = vmatpush3.msra.mxu0 %v4575_v51 }
 0x4d9   :  { %3426 = vmatprep.subr.mxu1 %v4584_v18  ;;  %3482 = vmatprep.subr.mxu0 %v4584_v18 }
 0x4da   :  { %3427 = vmatpush3.msra.mxu1 %v4584_v18  ;;  %3483 = vmatpush3.msra.mxu0 %v4584_v18 }
 0x4db   :  { %3428 = vmatprep.subr.mxu1 %v4593_v1  ;;  %3484 = vmatprep.subr.mxu0 %v4593_v1 }
 0x4dc   :  { %3429 = vmatpush3.msra.mxu1 %v4593_v1  ;;  %3485 = vmatpush3.msra.mxu0 %v4593_v1 }
 0x4dd   :  { %3430 = vmatprep.subr.mxu1 %v4602_v19  ;;  %3486 = vmatprep.subr.mxu0 %v4602_v19 }
 0x4de   :  { %3431 = vmatpush3.msra.mxu1 %v4602_v19  ;;  %3487 = vmatpush3.msra.mxu0 %v4602_v19 }
 0x4df   :  { %3432 = vmatprep.subr.mxu1 %v4611_v33  ;;  %3488 = vmatprep.subr.mxu0 %v4611_v33 }
 0x4e0   :  { %3433 = vmatpush3.msra.mxu1 %v4611_v33  ;;  %3489 = vmatpush3.msra.mxu0 %v4611_v33 }
 0x4e1   :  { %3434 = vmatprep.subr.mxu1 %v4618_v22  ;;  %3490 = vmatprep.subr.mxu0 %v4618_v22 }
 0x4e2   :  { %3435 = vmatpush3.msra.mxu1 %v4618_v22  ;;  %3491 = vmatpush3.msra.mxu0 %v4618_v22 }
 0x4e3   :  { %3436 = vmatprep.subr.mxu1 %v4625_v57  ;;  %3492 = vmatprep.subr.mxu0 %v4625_v57 }
 0x4e4   :  { %3437 = vmatpush3.msra.mxu1 %v4625_v57  ;;  %3493 = vmatpush3.msra.mxu0 %v4625_v57 }
 0x4e5   :  { %3439 = vmatmul.mubr.f32.vlgmr.msra.gmra.mxu1 %v3672_v4  ;;  %3495 = vmatmul.mubr.f32.vlgmr.msra.gmra.mxu0 %v4149_v2  ;;  %v1898_v2 = vld [vmem:[#allocation11 + $0xe8] sm:$0xff] }
 0x4e6   :  { %3497 = vmatprep.mubr.f32.mxu0 %v4158_v16  ;;  %3441 = vmatprep.mubr.f32.mxu1 %v3673_v27  ;;  %v1914_v16 = vld [vmem:[#allocation11 + $0x168] sm:$0xff]  ;;  %v1905_v27 = vld [vmem:[#allocation11 + $0x120] sm:$0xff] }
 0x4e7   :  { %2868 = vmatprep.subr.mxu1 %v1900_v28  ;;  %3518 = vmatprep.subr.mxu0 %v1916_v50  ;;  %v1890_v28 = vld [vmem:[#allocation11 + $0xa8] sm:$0xff] }
 0x4e8   :  { %2869 = vmatpush3.msra.mxu1 %v1884_v3  ;;  %3519 = vmatpush3.msra.mxu0 %v1916_v50  ;;  %v1906_v50 = vld [vmem:[#allocation11 + $0x128] sm:$0xff]  ;;  %v1889_v3 = vld [vmem:[#allocation11 + $0xa0] sm:$0xff] }
 0x4e9   :  { %3498 = vmatmul.mubr.f32.gmra.mxu0 %v4154_v12  ;;  %3442 = vmatmul.mubr.f32.gmra.mxu1 %v3674_v56  ;;  %v1897_v12 = vld [vmem:[#allocation11 + $0xe0] sm:$0xff]  ;;  %v1874_v4 = vld [vmem:[#allocation11 + $0x28] sm:$0xff]  ;;  %v1904_v56 = vld [vmem:[#allocation11 + $0x118] sm:$0xff] }
 0x4ea   :  { %3500 = vmatprep.mubr.f32.mxu0 %v4165_v31  ;;  %3444 = vmatprep.mubr.f32.mxu1 %v3675_v11  ;;  %v1913_v31 = vld [vmem:[#allocation11 + $0x160] sm:$0xff]  ;;  %v1887_v11 = vld [vmem:[#allocation11 + $0x90] sm:$0xff] }
 0x4eb   :  { %2870 = vmatprep.subr.mxu1 %v1899_v52  ;;  %3520 = vmatprep.subr.mxu0 %v1915_v26  ;;  %v1873_v52 = vld [vmem:[#allocation11 + $0x20] sm:$0xff] }
 0x4ec   :  { %2871 = vmatpush3.msra.mxu1 %v1883_v17  ;;  %3521 = vmatpush3.msra.mxu0 %v1915_v26  ;;  %v1888_v26 = vld [vmem:[#allocation11 + $0x98] sm:$0xff] }
 0x4ed   :  { %3501 = vmatmul.mubr.f32.gmra.mxu0 %v4161_v32  ;;  %3445 = vmatmul.mubr.f32.gmra.mxu1 %v4401_v20  ;;  %v1896_v32 = vld [vmem:[#allocation11 + $0xd8] sm:$0xff]  ;;  %v4847_v20 = vld [vmem:[#allocation21_spill] sm:$0xff] }
 0x4ee   :  { %3503 = vmatprep.mubr.f32.mxu0 %v4172_v29  ;;  %3447 = vmatprep.mubr.f32.mxu1 %v4405_v24  ;;  %v1912_v29 = vld [vmem:[#allocation11 + $0x158] sm:$0xff] }
 0x4ef   :  { %2872 = vmatprep.subr.mxu1 %v1898_v2  ;;  %3522 = vmatprep.subr.mxu0 %v1914_v16  ;;  %v4848_v24 = vld [vmem:[#allocation22_spill] sm:$0xff] }
 0x4f0   :  { %2873 = vmatpush3.msra.mxu1 %v1882_v21  ;;  %3523 = vmatpush3.msra.mxu0 %v1914_v16  ;;  %v1872_v17 = vld [vmem:[#allocation11 + $0x18] sm:$0xff]  ;;  %v1903_v2 = vld [vmem:[#allocation11 + $0x110] sm:$0xff]  ;;  %v1886_v21 = vld [vmem:[#allocation11 + $0x88] sm:$0xff] }
 0x4f1   :  { %3504 = vmatmul.mubr.f32.gmra.mxu0 %v4168_v36  ;;  %3448 = vmatmul.mubr.f32.gmra.mxu1 %v4409_v38  ;;  %v4850_v36 = vld [vmem:[#allocation29_spill] sm:$0xff] }
 0x4f2   :  { %3506 = vmatprep.mubr.f32.mxu0 %v4831_v42  ;;  %3450 = vmatprep.mubr.f32.mxu1 %v4413_v44  ;;  %v1895_v38 = vld [vmem:[#allocation11 + $0xd0] sm:$0xff]  ;;  %v4851_v44 = vld [vmem:[#allocation23_spill] sm:$0xff] }
 0x4f3   :  { %2874 = vmatprep.subr.mxu1 %v1897_v12  ;;  %3524 = vmatprep.subr.mxu0 %v1913_v31  ;;  %v1911_v42 = vld [vmem:[#allocation11 + $0x150] sm:$0xff]  ;;  %v1902_v12 = vld [vmem:[#allocation11 + $0x108] sm:$0xff] }
 0x4f4   :  { %2875 = vmatpush3.msra.mxu1 %v1881_v34  ;;  %3525 = vmatpush3.msra.mxu0 %v1913_v31  ;;  %v1871_v16 = vld [vmem:[#allocation11 + $0x10] sm:$0xff]  ;;  %v1870_v31 = vld [vmem:[#allocation11 + $0x8] sm:$0xff]  ;;  %v1885_v34 = vld [vmem:[#allocation11 + $0x80] sm:$0xff] }
 0x4f5   :  { %3507 = vmatmul.mubr.f32.gmra.mxu0 %v4847_v20  ;;  %3451 = vmatmul.mubr.f32.gmra.mxu1 %v4848_v24 }
 0x4f6   :  { %3509 = vmatprep.mubr.f32.mxu0 %v4849_v13  ;;  %3453 = vmatprep.mubr.f32.mxu1 %v4850_v36 }
 0x4f7   :  { %2876 = vmatprep.subr.mxu1 %v1896_v32  ;;  %3526 = vmatprep.subr.mxu0 %v1912_v29  ;;  %v1901_v32 = vld [vmem:[#allocation11 + $0x100] sm:$0xff] }
 0x4f8   :  { %2877 = vmatpush3.msra.mxu1 %v1880_v37  ;;  %3527 = vmatpush3.msra.mxu0 %v1912_v29  ;;  %v1869_v29 = vld [vmem:[#allocation11] sm:$0xff] }
 0x4f9   :  { %3510 = vmatmul.mubr.f32.gmra.mxu0 %v4851_v44  ;;  %3454 = vmatmul.mubr.f32.gmra.mxu1 %v4852_v45 }
 0x4fa   :  { %3512 = vmatprep.mubr.f32.mxu0 %v4853_v25  ;;  %3456 = vmatprep.mubr.f32.mxu1 %v4854_v61 }
 0x4fb   :  { %2878 = vmatprep.subr.mxu1 %v1895_v38  ;;  %3528 = vmatprep.subr.mxu0 %v1911_v42 }
 0x4fc   :  { %2879 = vmatpush3.msra.mxu1 %v1879_v43  ;;  %3529 = vmatpush3.msra.mxu0 %v1911_v42 }
 0x4fd   :  { %3513 = vmatmul.mubr.f32.gmra.mxu0 %v4855_v40  ;;  %3457 = vmatmul.mubr.f32.gmra.mxu1 %v4856_v39 }
 0x4fe   :  { %3515 = vmatprep.mubr.f32.mxu0 %v4857_v35  ;;  %3459 = vmatprep.mubr.f32.mxu1 %v4858_v46 }
 0x4ff   :  { %2880 = vmatprep.subr.mxu1 %v1894_v58  ;;  %3530 = vmatprep.subr.mxu0 %v1910_v53 }
 0x500   :  { %2881 = vmatpush3.msra.mxu1 %v1878_v15  ;;  %3531 = vmatpush3.msra.mxu0 %v1910_v53 }
 0x501   :  { %3516 = vmatmul.mubr.f32.gmra.mxu0 %v4859_v0  ;;  %3460 = vmatmul.mubr.f32.gmra.mxu1 %v4860_v30 }
 0x502   :  { %2882 = vmatprep.subr.mxu1 %v1893_v5  ;;  %3532 = vmatprep.subr.mxu0 %v1909_v60 }
 0x503   :  { %2883 = vmatpush3.msra.mxu1 %v1877_v10  ;;  %3533 = vmatpush3.msra.mxu0 %v1909_v60 }
 0x504   :  { %2884 = vmatprep.subr.mxu1 %v1892_v54  ;;  %3534 = vmatprep.subr.mxu0 %v1908_v63  ;;  %v2293_v54 = vld [vmem:[#allocation13 + $0x40] sm:$0xff] }
 0x505   :  { %2885 = vmatpush3.msra.mxu1 %v1876_v59  ;;  %3535 = vmatpush3.msra.mxu0 %v1908_v63  ;;  %v2292_v63 = vld [vmem:[#allocation13 + $0x38] sm:$0xff]  ;;  %v2291_v59 = vld [vmem:[#allocation13 + $0x30] sm:$0xff] }
 0x506   :  { %2886 = vmatprep.subr.mxu1 %v1891_v23  ;;  %3536 = vmatprep.subr.mxu0 %v1907_v47  ;;  %v2290_v23 = vld [vmem:[#allocation13 + $0x28] sm:$0xff] }
 0x507   :  { %2887 = vmatpush3.msra.mxu1 %v1875_v41  ;;  %3537 = vmatpush3.msra.mxu0 %v1907_v47  ;;  %v2289_v47 = vld [vmem:[#allocation13 + $0x20] sm:$0xff]  ;;  %v2288_v41 = vld [vmem:[#allocation13 + $0x18] sm:$0xff] }
 0x508   :  { %2888 = vmatprep.subr.mxu1 %v1890_v28  ;;  %3538 = vmatprep.subr.mxu0 %v1906_v50  ;;  %v2287_v28 = vld [vmem:[#allocation13 + $0x10] sm:$0xff] }
 0x509   :  { %2889 = vmatpush3.msra.mxu1 %v1874_v4  ;;  %3539 = vmatpush3.msra.mxu0 %v1906_v50  ;;  %v2286_v50 = vld [vmem:[#allocation13 + $0x8] sm:$0xff] }
 0x50a   :  { %2890 = vmatprep.subr.mxu1 %v1889_v3  ;;  %3540 = vmatprep.subr.mxu0 %v1905_v27  ;;  %v2285_v3 = vld [vmem:[#allocation13] sm:$0xff] }
 0x50b   :  { %2891 = vmatpush3.msra.mxu1 %v1873_v52  ;;  %3541 = vmatpush3.msra.mxu0 %v1905_v27 }
 0x50c   :  { %2892 = vmatprep.subr.mxu1 %v1888_v26  ;;  %3542 = vmatprep.subr.mxu0 %v1904_v56 }
 0x50d   :  { %2893 = vmatpush3.msra.mxu1 %v1872_v17  ;;  %3543 = vmatpush3.msra.mxu0 %v1904_v56 }
 0x50e   :  { %2894 = vmatprep.subr.mxu1 %v1887_v11  ;;  %3544 = vmatprep.subr.mxu0 %v1903_v2 }
 0x50f   :  { %2895 = vmatpush3.msra.mxu1 %v1871_v16  ;;  %3545 = vmatpush3.msra.mxu0 %v1903_v2 }
 0x510   :  { %2896 = vmatprep.subr.mxu1 %v1886_v21  ;;  %3546 = vmatprep.subr.mxu0 %v1902_v12 }
 0x511   :  { %2897 = vmatpush3.msra.mxu1 %v1870_v31  ;;  %3547 = vmatpush3.msra.mxu0 %v1902_v12 }
 0x512   :  { %2898 = vmatprep.subr.mxu1 %v1885_v34  ;;  %3548 = vmatprep.subr.mxu0 %v1901_v32 }
 0x513   :  { %2899 = vmatpush3.msra.mxu1 %v1869_v29  ;;  %3549 = vmatpush3.msra.mxu0 %v1901_v32 }
 0x5a5   :  { %v3440_v20 = vpop.f32.mrf.mxu1  ;;  %v3496_v24 = vpop.f32.mrf.mxu0 }
 0x5a7   :  { %v1645_v37 = vpop.f32.mrf.mxu1  ;;  %v1790_v13 = vpop.f32.mrf.mxu0 }
 0x5a8   :  { %1988 = vmatprep.mubr.f32.mxu1 %v1645_v37  ;;  %3550 = vmatprep.mubr.f32.mxu0 %v1790_v13 }
 0x5a9   :  { %v3499_v36 = vpop.f32.mrf.mxu0  ;;  %1989 = vmatmul.mubr.f32.vlgmr.msra.gmra.mxu1 %v4625_v57  ;;  %3551 = vmatmul.mubr.f32.vlgmr.msra.gmra.mxu0 %v3496_v24  ;;  %v3443_v38 = vpop.f32.mrf.mxu1 }
 0x5aa   :  { %1993 = vmatprep.mubr.f32.mxu1 %v3440_v20 }
 0x5ab   :  { %v1800_v42 = vpop.f32.mrf.mxu0  ;;  %v1655_v44 = vpop.f32.mrf.mxu1 }
 0x5ac   :  { %3553 = vmatprep.mubr.f32.mxu0 %v1800_v42 }
 0x5ad   :  { %v3502_v45 = vpop.f32.mrf.mxu0  ;;  %1994 = vmatmul.mubr.f32.gmra.mxu1 %v4618_v22  ;;  %3554 = vmatmul.mubr.f32.gmra.mxu0 %v3499_v36  ;;  %v3446_v25 = vpop.f32.mrf.mxu1 }
 0x5ae   :  { %1998 = vmatprep.mubr.f32.mxu1 %v1655_v44 }
 0x5af   :  { %v1810_v43 = vpop.f32.mrf.mxu0  ;;  %v1665_v58 = vpop.f32.mrf.mxu1 }
 0x5b0   :  { %3556 = vmatprep.mubr.f32.mxu0 %v1810_v43 }
 0x5b1   :  { %v3505_v61 = vpop.f32.mrf.mxu0  ;;  %1999 = vmatmul.mubr.f32.gmra.mxu1 %v4611_v33  ;;  %3557 = vmatmul.mubr.f32.gmra.mxu0 %v3502_v45  ;;  %v3449_v22 = vpop.f32.mrf.mxu1 }
 0x5b2   :  { %2003 = vmatprep.mubr.f32.mxu1 %v3443_v38 }
 0x5b3   :  { %v1820_v57 = vpop.f32.mrf.mxu0  ;;  %v1675_v33 = vpop.f32.mrf.mxu1 }
 0x5b4   :  { %3559 = vmatprep.mubr.f32.mxu0 %v1820_v57 }
 0x5b5   :  { %v3508_v53 = vpop.f32.mrf.mxu0  ;;  %2004 = vmatmul.mubr.f32.gmra.mxu1 %v4602_v19  ;;  %3560 = vmatmul.mubr.f32.gmra.mxu0 %v3505_v61  ;;  %v3452_v19 = vpop.f32.mrf.mxu1 }
 0x5b6   :  { %2008 = vmatprep.mubr.f32.mxu1 %v1665_v58 }
 0x5b7   :  { %v1830_v40 = vpop.f32.mrf.mxu0 }
 0x5b8   :  { %3562 = vmatprep.mubr.f32.mxu0 %v1830_v40 }
 0x5b9   :  { %v3511_v39 = vpop.f32.mrf.mxu0  ;;  %2009 = vmatmul.mubr.f32.gmra.mxu1 %v4593_v1  ;;  %3563 = vmatmul.mubr.f32.gmra.mxu0 %v3508_v53  ;;  %v1685_v1 = vpop.f32.mrf.mxu1 }
 0x5ba   :  { %2013 = vmatprep.mubr.f32.mxu1 %v3446_v25 }
 0x5bb   :  { %v1840_v15 = vpop.f32.mrf.mxu0  ;;  %v3455_v10 = vpop.f32.mrf.mxu1 }
 0x5bc   :  { %3565 = vmatprep.mubr.f32.mxu0 %v1840_v15 }
 0x5bd   :  { %v3514_v35 = vpop.f32.mrf.mxu0  ;;  %2014 = vmatmul.mubr.f32.gmra.mxu1 %v4584_v18  ;;  %3566 = vmatmul.mubr.f32.gmra.mxu0 %v3511_v39  ;;  %v1695_v18 = vpop.f32.mrf.mxu1 }
 0x5be   :  { %2018 = vmatprep.mubr.f32.mxu1 %v1675_v33 }
 0x5bf   :  { %v1850_v46 = vpop.f32.mrf.mxu0  ;;  %v3458_v0 = vpop.f32.mrf.mxu1 }
 0x5c0   :  { %3568 = vmatprep.mubr.f32.mxu0 %v1850_v46 }
 0x5c1   :  { %v3517_v5 = vpop.f32.mrf.mxu0  ;;  %2019 = vmatmul.mubr.f32.gmra.mxu1 %v4575_v51  ;;  %3569 = vmatmul.mubr.f32.gmra.mxu0 %v3514_v35  ;;  %v1705_v51 = vpop.f32.mrf.mxu1 }
 0x5c2   :  { %2023 = vmatprep.mubr.f32.mxu1 %v3449_v22 }
 0x5c3   :  { %v1860_v60 = vpop.f32.mrf.mxu0  ;;  %v3461_v30 = vpop.f32.mrf.mxu1 }
 0x5c4   :  { %3571 = vmatprep.mubr.f32.mxu0 %v1860_v60 }
 0x5c5   :  { %2024 = vmatmul.mubr.f32.gmra.mxu1 %v4566_v7  ;;  %3572 = vmatmul.mubr.f32.gmra.mxu0 %v3517_v5  ;;  %v1715_v7 = vpop.f32.mrf.mxu1 }
 0x5c6   :  { %2028 = vmatprep.mubr.f32.mxu1 %v1685_v1 }
 0x5c9   :  { %2029 = vmatmul.mubr.f32.gmra.mxu1 %v4558_v14  ;;  %v2294_v14 = vld [vmem:[#allocation13 + $0x48] sm:$0xff] }
 0x5ca   :  { %2033 = vmatprep.mubr.f32.mxu1 %v3452_v19 }
 0x5cd   :  { %2034 = vmatmul.mubr.f32.gmra.mxu1 %v4550_v9  ;;  %v3855_v9 = vmov 0.0  }
 0x5ce   :  { %2038 = vmatprep.mubr.f32.mxu1 %v1695_v18  ;;  %3574 = vmatprep.subr.mxu0 %v3855_v9 }
 0x5cf   :  { %3609 = vmatprep.subr.mxu1 %v3855_v9  ;;  %3606 = vmatprep.mubr.msk.f32.mxu0 %vm3856_vm0, %v3855_v9 }
 0x5d1   :  { %2039 = vmatmul.mubr.f32.gmra.mxu1 %v4540_v62  ;;  %v2295_v62 = vld [vmem:[#allocation13 + $0x50] sm:$0xff] }
 0x5d2   :  { %2043 = vmatprep.mubr.f32.mxu1 %v3455_v10 }
 0x5d5   :  { %2044 = vmatmul.mubr.f32.gmra.mxu1 %v4531_v55  ;;  %v2299_v55 = vld [vmem:[#allocation13 + $0x70] sm:$0xff] }
 0x5d6   :  { %2048 = vmatprep.mubr.f32.mxu1 %v1705_v51 }
 0x5d9   :  { %2049 = vmatmul.mubr.f32.gmra.mxu1 %v4524_v6  ;;  %v2300_v6 = vld [vmem:[#allocation13 + $0x78] sm:$0xff] }
 0x5da   :  { %2053 = vmatprep.mubr.f32.mxu1 %v3458_v0  ;;  %3610 = vmatpush3.msra.mxu1 %v2300_v6 }
 0x5db   :  { %3611 = vmatprep.subr.mxu1 %v3855_v9 }
 0x5dc   :  { %3612 = vmatpush3.msra.mxu1 %v2299_v55 }
 0x5dd   :  { %2054 = vmatmul.mubr.f32.gmra.mxu1 %v4517_v49  ;;  %v2298_v49 = vld [vmem:[#allocation13 + $0x68] sm:$0xff]  ;;  %3613 = vmatprep.subr.mxu1 %v3855_v9 }
 0x5de   :  { %2058 = vmatprep.mubr.f32.mxu1 %v1715_v7  ;;  %3614 = vmatpush3.msra.mxu1 %v2298_v49 }
 0x5df   :  { %3615 = vmatprep.subr.mxu1 %v3855_v9 }
 0x5e1   :  { %2059 = vmatmul.mubr.f32.gmra.mxu1 %v4510_v8  ;;  %v2296_v8 = vld [vmem:[#allocation13 + $0x58] sm:$0xff] }
 0x5e2   :  { %2063 = vmatprep.mubr.f32.mxu1 %v3461_v30 }
 0x5e5   :  { %2064 = vmatmul.mubr.f32.gmra.mxu1 %v4507_v48  ;;  %v2297_v48 = vld [vmem:[#allocation13 + $0x60] sm:$0xff] }
 0x5e6   :  { %3641 = vmatprep.mubr.msk.f32.mxu1 %vm3856_vm0, %v3855_v9  ;;  %3616 = vmatpush3.msra.mxu1 %v2297_v48 }
 0x5e7   :  { %3617 = vmatprep.subr.mxu1 %v3855_v9 }
 0x5e8   :  { %3618 = vmatpush3.msra.mxu1 %v2296_v8 }
 0x5e9   :  { %3619 = vmatprep.subr.mxu1 %v3855_v9 }
 0x5ea   :  { %3620 = vmatpush3.msra.mxu1 %v2295_v62 }
 0x5eb   :  { %3621 = vmatprep.subr.mxu1 %v3855_v9 }
 0x5ec   :  { %3622 = vmatpush3.msra.mxu1 %v2294_v14 }
 0x5ed   :  { %3623 = vmatprep.subr.mxu1 %v3855_v9 }
 0x5ee   :  { %3624 = vmatpush3.msra.mxu1 %v2293_v54  ;;  %v4729_v54 = vld [vmem:[%s4794_s8] ss:$0 sm:$0xff] }
 0x5ef   :  { %3625 = vmatprep.subr.mxu1 %v3855_v9 }
 0x5f0   :  { %3626 = vmatpush3.msra.mxu1 %v2292_v63 }
 0x5f1   :  { %3627 = vmatprep.subr.mxu1 %v3855_v9 }
 0x5f2   :  { %3628 = vmatpush3.msra.mxu1 %v2291_v59 }
 0x5f3   :  { %3629 = vmatprep.subr.mxu1 %v3855_v9 }
 0x5f4   :  { %3630 = vmatpush3.msra.mxu1 %v2290_v23 }
 0x5f5   :  { %3631 = vmatprep.subr.mxu1 %v3855_v9 }
 0x5f6   :  { %3632 = vmatpush3.msra.mxu1 %v2289_v47 }
 0x5f7   :  { %3633 = vmatprep.subr.mxu1 %v3855_v9 }
 0x5f8   :  { %3634 = vmatpush3.msra.mxu1 %v2288_v41 }
 0x5f9   :  { %3635 = vmatprep.subr.mxu1 %v3855_v9 }
 0x5fa   :  { %3636 = vmatpush3.msra.mxu1 %v2287_v28 }
 0x5fb   :  { %3637 = vmatprep.subr.mxu1 %v3855_v9 }
 0x5fc   :  { %3638 = vmatpush3.msra.mxu1 %v2286_v50 }
 0x5fd   :  { %3639 = vmatprep.subr.mxu1 %v3855_v9 }
 0x5fe   :  { %3640 = vmatpush3.msra.mxu1 %v2285_v3 }
 0x669   :  { %v2900_v4 = vpop.f32.mrf.mxu1  ;;  %v4700_v11 = vpop.f32.mrf.mxu0 }
 0x66b   :  { %v2901_v27 = vpop.f32.mrf.mxu1  ;;  %v4704_v12 = vpop.f32.mrf.mxu0 }
 0x66c   :  { %v4696_v52 = vadd.f32 %v2901_v27, %v2900_v4 }
 0x66d   :  { %v2903_v26 = vpop.f32.mrf.mxu1  ;;  %v4708_v29 = vpop.f32.mrf.mxu0 }
 0x66f   :  { %v2904_v56 = vpop.f32.mrf.mxu1  ;;  %v4712_v13 = vpop.f32.mrf.mxu0 }
 0x670   :  { %v4698_v17 = vadd.f32 %v2904_v56, %v2903_v26 }
 0x671   :  { %v2906_v2 = vpop.f32.mrf.mxu1  ;;  %v4718_v42 = vpop.f32.mrf.mxu0 }
 0x673   :  { %v2907_v16 = vpop.f32.mrf.mxu1  ;;  %v4720_v43 = vpop.f32.mrf.mxu0 }
 0x674   :  { %v4702_v21 = vadd.f32 %v2907_v16, %v2906_v2 }
 0x675   :  { %v2909_v31 = vpop.f32.mrf.mxu1  ;;  %v4722_v57 = vpop.f32.mrf.mxu0 }
 0x677   :  { %v2910_v34 = vpop.f32.mrf.mxu1  ;;  %v4724_v40 = vpop.f32.mrf.mxu0 }
 0x678   :  { %v4706_v32 = vadd.f32 %v2910_v34, %v2909_v31 }
 0x679   :  { %v2912_v20 = vpop.f32.mrf.mxu1  ;;  %v3564_v15 = vpop.f32.mrf.mxu0 }
 0x67b   :  { %v2913_v24 = vpop.f32.mrf.mxu1  ;;  %v2175_v46 = vpop.f32.mrf.mxu0 }
 0x67c   :  { %v4710_v37 = vadd.f32 %v2913_v24, %v2912_v20 }
 0x67d   :  { %v4714_v36 = vpop.f32.mrf.mxu1  ;;  %v3567_v60 = vpop.f32.mrf.mxu0 }
 0x67f   :  { %v4716_v38 = vpop.f32.mrf.mxu1  ;;  %v2185_v18 = vpop.f32.mrf.mxu0 }
 0x681   :  { %v2918_v44 = vpop.f32.mrf.mxu1  ;;  %v3570_v30 = vpop.f32.mrf.mxu0 }
 0x683   :  { %v2919_v45 = vpop.f32.mrf.mxu1  ;;  %v2195_v55 = vpop.f32.mrf.mxu0 }
 0x685   :  { %v2921_v25 = vpop.f32.mrf.mxu1  ;;  %v3573_v63 = vpop.f32.mrf.mxu0 }
 0x687   :  { %v2922_v61 = vpop.f32.mrf.mxu1  ;;  %v2205_v4 = vpop.f32.mrf.mxu0 }
 0x688   :  { %v2923_v24 = vadd.f32 %v2922_v61, %v2921_v25 }
 0x689   :  { %v2924_v58 = vpop.f32.mrf.mxu1 }
 0x68b   :  { %v2925_v53 = vpop.f32.mrf.mxu1 }
 0x68c   :  { %v2926_v31 = vadd.f32 %v2925_v53, %v2924_v58  ;;  %v2917_v58 = vadd.f32 %v4716_v38, %v4714_v36  ;;  %v2026_v53 = vadd.f32 %v2923_v24, %v4729_v54  ;;  %v2011_v36 = vadd.f32 %v4710_v37, %v4729_v54 }
 0x68d   :  { %v2927_v22 = vpop.f32.mrf.mxu1  ;;  %v1996_v37 = vadd.f32 %v4698_v17, %v4729_v54 }
 0x68f   :  { %v2928_v39 = vpop.f32.mrf.mxu1 }
 0x690   :  { %v2929_v56 = vadd.f32 %v2928_v39, %v2927_v22  ;;  %v2920_v22 = vadd.f32 %v2919_v45, %v2918_v44  ;;  %v2031_v39 = vadd.f32 %v2926_v31, %v4729_v54  ;;  %v2016_v44 = vadd.f32 %v2917_v58, %v4729_v54 }
 0x691   :  { %v2930_v33 = vpop.f32.mrf.mxu1  ;;  %v2171_v45 = vadd.f32 %v4722_v57, %v2026_v53  ;;  %v2001_v57 = vadd.f32 %v4702_v21, %v4729_v54  ;;  %v2141_v21 = vadd.f32 %v4700_v11, %v1996_v37  ;;  %v2419_v11 = vld [vmem:[%s4796_s10] ss:$0 sm:$0xff]  ;;  %s3857_s10 = smov [#allocation14]  }
 0x692   :  { %v2021_v25 = vadd.f32 %v2920_v22, %v4729_v54  ;;  %v2176_v61 = vadd.f32 %v2175_v46, %v2031_v39  ;;  %v2161_v46 = vadd.f32 %v4718_v42, %v2016_v44  ;;  %s2404_s13 = sshll.u32 %s3857_s10, 4  ;;  %s2405_s13 = int_to_ptr.vmem [resolvable:$true] %s2404_s13 }
 0x693   :  { %v2931_v35 = vpop.f32.mrf.mxu1  ;;  %v2146_v42 = vadd.f32 %v4712_v13, %v2001_v57  ;;  %v2378_v13 = vlaneseq  ;;  %s3816_s14 = scalar_lea.vmem %s2405_s13, 32  ;;  %p3821_p8 = scmp.lt.s32.totalorder %s2405_s13, %s2405_s13 }
 0x694   :  { %v2932_v3 = vadd.f32 %v2931_v35, %v2930_v33  ;;  %v2036_v33 = vadd.f32 %v2929_v56, %v4729_v54  ;;  %v2166_v38 = vadd.f32 %v4724_v40, %v2021_v25  ;;  %p3817_p7 = scmp.ne.s32.totalorder %s2405_s13, %s3816_s14  ;;  %p3822_p9 = scmp.lt.s32.totalorder %s3816_s14, %s3816_s14 }
 0x695   :  { %v2933_v19 = vpop.f32.mrf.mxu1 }
 0x696   :  { %v2041_v34 = vadd.f32 %v2932_v3, %v4729_v54  ;;  %p3823_p10 = por %p3822_p9, %p3821_p8 }
 0x697   :  { %v2934_v5 = vpop.f32.mrf.mxu1 }
 0x698   :  { %v2935_v41 = vadd.f32 %v2934_v5, %v2933_v19  ;;  %v2186_v19 = vadd.f32 %v2185_v18, %v2041_v34  ;;  %v2181_v5 = vadd.f32 %v3564_v15, %v2036_v33  ;;  %v2006_v15 = vadd.f32 %v4706_v32, %v4729_v54  ;;  %p3824_p11 = pnand %p3823_p10, %p3817_p7 }
 0x699   :  { %v2936_v1 = vpop.f32.mrf.mxu1  ;;  %v1991_v32 = vadd.f32 %v4696_v52, %v4729_v54 }
 0x69a   :  { %v2046_v2 = vadd.f32 %v2935_v41, %v4729_v54  ;;  %v2151_v40 = vadd.f32 %v4708_v29, %v2006_v15  ;;  %v2214_v29 = vld [vmem:[#allocation5] sm:$0x3] }
 0x69b   :  { %v2937_v10 = vpop.f32.mrf.mxu1  ;;  %v2136_v17 = vadd.f32 %v4704_v12, %v1991_v32 }
 0x69c   :  { %v2938_v59 = vadd.f32 %v2937_v10, %v2936_v1  ;;  %v2191_v35 = vadd.f32 %v3567_v60, %v2046_v2  ;;  %v2156_v60 = vadd.f32 %v4720_v43, %v2011_v36  ;;  %v2379_v1 = vand.u32 127, %v2378_v13 }
 0x69d   :  { %v2939_v0 = vpop.f32.mrf.mxu1 }
 0x69e   :  { %v2051_v27 = vadd.f32 %v2938_v59, %v4729_v54  ;;  %vm2380_vm1 = vcmp.lt.s32.totalorder %v2379_v1, 5 }
 0x69f   :  { %v2940_v51 = vpop.f32.mrf.mxu1 }
 0x6a0   :  { %v2941_v62 = vadd.f32 %v2940_v51, %v2939_v0  ;;  %v2196_v20 = vadd.f32 %v2195_v55, %v2051_v27 }
 0x6a1   :  { %v2942_v7 = vpop.f32.mrf.mxu1 }
 0x6a2   :  { %v2056_v28 = vadd.f32 %v2941_v62, %v4729_v54 }
 0x6a3   :  { %v2943_v6 = vpop.f32.mrf.mxu1 }
 0x6a4   :  { %v2944_v48 = vadd.f32 %v2943_v6, %v2942_v7  ;;  %v2201_v16 = vadd.f32 %v3570_v30, %v2056_v28 }
 0x6a5   :  { %v2945_v49 = vpop.f32.mrf.mxu1 }
 0x6a6   :  { %v2061_v23 = vadd.f32 %v2944_v48, %v4729_v54 }
 0x6a7   :  { %v2946_v8 = vpop.f32.mrf.mxu1 }
 0x6a8   :  { %v2947_v14 = vadd.f32 %v2946_v8, %v2945_v49  ;;  %v2206_v26 = vadd.f32 %v2205_v4, %v2061_v23 }
 0x6aa   :  { %v2066_v47 = vadd.f32 %v2947_v14, %v4729_v54 }
 0x6ac   :  { %v2211_v50 = vadd.f32 %v3573_v63, %v2066_v47 }
 0x6ae   :  { %3575 = vmatpush3.msra.mxu0 %v2211_v50 }
 0x6af   :  { %3576 = vmatprep.subr.mxu0 %v3855_v9 }
 0x6b0   :  { %3577 = vmatpush3.msra.mxu0 %v2206_v26 }
 0x6b1   :  { %3578 = vmatprep.subr.mxu0 %v3855_v9 }
 0x6b2   :  { %3579 = vmatpush3.msra.mxu0 %v2201_v16 }
 0x6b3   :  { %3580 = vmatprep.subr.mxu0 %v3855_v9 }
 0x6b4   :  { %3581 = vmatpush3.msra.mxu0 %v2196_v20 }
 0x6b5   :  { %3582 = vmatprep.subr.mxu0 %v3855_v9 }
 0x6b6   :  { %3583 = vmatpush3.msra.mxu0 %v2191_v35 }
 0x6b7   :  { %3584 = vmatprep.subr.mxu0 %v3855_v9 }
 0x6b8   :  { %3585 = vmatpush3.msra.mxu0 %v2186_v19 }
 0x6b9   :  { %3586 = vmatprep.subr.mxu0 %v3855_v9 }
 0x6ba   :  { %3587 = vmatpush3.msra.mxu0 %v2181_v5 }
 0x6bb   :  { %3588 = vmatprep.subr.mxu0 %v3855_v9 }
 0x6bc   :  { %3589 = vmatpush3.msra.mxu0 %v2176_v61 }
 0x6bd   :  { %3590 = vmatprep.subr.mxu0 %v3855_v9 }
 0x6be   :  { %3591 = vmatpush3.msra.mxu0 %v2171_v45 }
 0x6bf   :  { %3592 = vmatprep.subr.mxu0 %v3855_v9 }
 0x6c0   :  { %3593 = vmatpush3.msra.mxu0 %v2166_v38 }
 0x6c1   :  { %3594 = vmatprep.subr.mxu0 %v3855_v9 }
 0x6c2   :  { %3595 = vmatpush3.msra.mxu0 %v2161_v46 }
 0x6c3   :  { %3596 = vmatprep.subr.mxu0 %v3855_v9 }
 0x6c4   :  { %3597 = vmatpush3.msra.mxu0 %v2156_v60 }
 0x6c5   :  { %3598 = vmatprep.subr.mxu0 %v3855_v9 }
 0x6c6   :  { %3599 = vmatpush3.msra.mxu0 %v2151_v40 }
 0x6c7   :  { %3600 = vmatprep.subr.mxu0 %v3855_v9 }
 0x6c8   :  { %3601 = vmatpush3.msra.mxu0 %v2146_v42 }
 0x6c9   :  { %3602 = vmatprep.subr.mxu0 %v3855_v9 }
 0x6ca   :  { %3603 = vmatpush3.msra.mxu0 %v2141_v21 }
 0x6cb   :  { %3604 = vmatprep.subr.mxu0 %v3855_v9 }
 0x6cc   :  { %3605 = vmatpush3.msra.mxu0 %v2136_v17 }
 0x6cd   :  { %3607 = vmatmul.mubr.f32.vlgmr.msra.gmra.mxu0 %v2214_v29 }
 0x78d   :  { %v2281_v43 = vpop.f32.mrf.mxu0 }
 0x78e   :  { %3642 = vmatmul.mubr.f32.vlgmr.msra.gmra.mxu1 %v2281_v43 }
 0x78f   :  { %v3608_v52 = vpop.f32.mrf.mxu0 }
 0x84e   :  { %v2374_v10 = vpop.f32.mrf.mxu1 }
 0x84f   :  { %v2375_v18 = vadd.f32 %v2419_v11, %v2374_v10 }
 0x850   :  { %v3643_v12 = vpop.f32.mrf.mxu1 }
 0x851   :  { %v2381_v0 = vsel %vm2380_vm1, %v2375_v18, -1e+30 }
 0x852   :  { %v2383_v51 = vsel %vm2382_vm2, %v2381_v0, -inf }
 0x853   :  { %2384 = vmax.xlane.f32.xlu0 %v2383_v51 }
 0x8dc   :  { %v2385_v9 = vpop.xlane.xlu0 %2384 }
 0x8dd   :  { %v2386_v30 = vsub.f32 %v2381_v0, %v2385_v9 }
 0x8df   :  { %v2387_v7 = vmul.f32 1.442695, %v2386_v30 }
 0x8e1   :  { %3656 = vpow2.f32 %v2387_v7 }
 0x8ee   :  { %v3657_v6 = vpop.eup %3656 }
 0x8ef   :  { %v2389_v55 = vsel %vm2380_vm1, %v3657_v6, 0.0 }
 0x8f0   :  { %v2390_v49 = vsel %vm2382_vm2, %v2389_v55, 0.0 }
 0x8f1   :  { %2391 = vadd.xlane.f32.xlu0 %v2390_v49 }
 0x97a   :  { %v2392_v48 = vpop.xlane.xlu0 %2391 }
 0x97b   :  { %3658 = vlog2.f32 %v2392_v48 }
 0x988   :  { %v3659_v8 = vpop.eup %3658 }
 0x989   :  { %v2394_v62 = vmul.f32 0.6931472, %v3659_v8 }
 0x98b   :  { %v2395_v14 = vsub.f32 %v2386_v30, %v2394_v62 }
 0x98d   :  { %v2396_v54 = vsel %vm2380_vm1, %v2395_v14, 0.0 }
 0x98e   :  { %2397 = vst [vmem:[#allocation14] sm:$0x3] %v2396_v54 }
 0x98f   :  { %3827 = shalt.err (!%p3824_p11)
}
 0x990   :  { %2407 = dma.vmem_to_hbm [thread:$0]  %s2405_s13, 32, %s4797_s11, [#allocation4]  }
 0x991   :  { %3844 = dma.done.wait [#allocation4], 32  }
 0x992   :  { %3845 = vsyncadd [#allocation4], 4294967264 }
 0x993   :  { %2411 = vsyncpa [#allocation3], 1 }
 0x994   :  { %2412 = vsyncpa [#allocation6], 1 }
 0x995   :  { %2413 = vsyncpa [#allocation9], 1 }
 0x996   :  { %2414 = vsyncpa [#allocation12], 1 }
 0x997   :  { %2415 = vsyncpa [#allocation4], 1 }

</bundles_post_ra>
